<compile_context>
chip_gen: v5e
topology: v5e:2x2
jax: 0.10.0
libtpu: 0.0.40
codegen_flags: <defaults>
</compile_context>

<pallas_src>
import functools

import jax
import jax.numpy as jnp
import numpy as np
from jax import lax
from jax.experimental import pallas as pl
from jax.experimental.pallas import tpu as pltpu

LN_EPS = 1e-5                 # torch.nn.LayerNorm default
C_PAD = 128                   # hidden channel axis padded to a full 128-lane width
N_MP_W = 7                    # stacked per-layer weight matrices
N_MP_B = 8                    # stacked per-layer bias / gamma / beta rows


def _round_up(v, m):
    return ((v + m - 1) // m) * m


# ---------------------------------------------------------------------------
# In-kernel helpers
# ---------------------------------------------------------------------------
def _layernorm(h, gamma, beta, c_real):
    """LayerNorm over the first `c_real` lanes of a 128-lane-padded tensor.

    Padded lanes of `h` are exactly zero by construction (zero-padded weights
    and biases), so the mean needs no masking; the centered difference still
    does (padded lanes would otherwise contribute mu^2 to the variance)."""
    mu = jnp.sum(h, axis=-1, keepdims=True) * (1.0 / c_real)
    lane = lax.broadcasted_iota(jnp.int32, h.shape, h.ndim - 1)
    d = jnp.where(lane < c_real, h - mu, 0.0)
    var = jnp.sum(d * d, axis=-1, keepdims=True) * (1.0 / c_real)
    # gamma/beta are zero beyond c_real, so padded lanes come out as exactly 0.
    return (h - mu) * lax.rsqrt(var + LN_EPS) * gamma + beta


# ---------------------------------------------------------------------------
# Fused forward kernel: encoders + L message-passing layers + decoder
#   grid = (n_layers, n_edge_tiles)      both axes sequential ("arbitrary")
#   scratch: x_sc [N,128], e_sc [E,128] resident across the whole grid,
#            agg_sc [N,128] re-zeroed per layer (scatter accumulator),
#            xw_s_sc/xw_d_sc [N,128] per-layer x@W1_src / x@W1_dst precompute.
# ---------------------------------------------------------------------------
def gnn_kernel(
    # data
    x_raw_ref, ea_raw_ref, src_ref, dst_ref,
    # node encoder MLP
    enc_n_w1, enc_n_b1, enc_n_w2, enc_n_b2, enc_n_g, enc_n_bt,
    # edge encoder MLP
    enc_e_w1, enc_e_b1, enc_e_w2, enc_e_b2, enc_e_g, enc_e_bt,
    # stacked per-layer MP weights / biases
    mp_w_ref, mp_b_ref,
    # node decoder MLP (no LayerNorm)
    dec_w1, dec_b1, dec_w2, dec_b2,
    # output
    xo_ref,
    # scratch
    x_sc, e_sc, agg_sc, xw_s_sc, xw_d_sc,
    *, c_hidden, tile_e, compute_dtype,
):
    l = pl.program_id(0)
    t = pl.program_id(1)
    n_l = pl.num_programs(0)
    n_t = pl.num_programs(1)
    n_pad = x_sc.shape[0]

    def mm(a, b):
        # MXU matmul in compute_dtype (bf16 in production) with f32 accumulation.
        return jnp.dot(a.astype(compute_dtype), b.astype(compute_dtype),
                       preferred_element_type=jnp.float32)

    # ---- one-time node encode (layer 0, first edge tile) ----
    @pl.when((l == 0) & (t == 0))
    def _():
        # first linear stays f32: raw channel width is tiny (K = in_pad)
        h = jnp.maximum(
            jnp.dot(x_raw_ref[...], enc_n_w1[...],
                    preferred_element_type=jnp.float32) + enc_n_b1[...], 0.0)
        h = mm(h, enc_n_w2[...]) + enc_n_b2[...]
        x_sc[...] = _layernorm(h, enc_n_g[...], enc_n_bt[...], c_hidden)

    e_off = pl.multiple_of(t * tile_e, tile_e)

    # ---- per-tile edge encode (layer 0 only) ----
    @pl.when(l == 0)
    def _():
        h = jnp.maximum(
            jnp.dot(ea_raw_ref[...], enc_e_w1[...],
                    preferred_element_type=jnp.float32) + enc_e_b1[...], 0.0)
        h = mm(h, enc_e_w2[...]) + enc_e_b2[...]
        e_sc[pl.ds(e_off, tile_e), :] = _layernorm(
            h, enc_e_g[...], enc_e_bt[...], c_hidden)

    # ---- per-layer init: scatter accumulator + gather/W1 reassociation ----
    @pl.when(t == 0)
    def _():
        agg_sc[...] = jnp.zeros(agg_sc.shape, jnp.float32)
        xw_s_sc[...] = mm(x_sc[...], mp_w_ref[0, 0])   # x @ W1_src
        xw_d_sc[...] = mm(x_sc[...], mp_w_ref[0, 1])   # x @ W1_dst

    # ---- edge-tile update for layer l ----
    e_tile = e_sc[pl.ds(e_off, tile_e), :]

    # tile-local one-hot masks: single compare + cast (exact in bf16: 0/1)
    node_iota = lax.broadcasted_iota(jnp.int32, (tile_e, n_pad), 1)
    src_oh = (node_iota == src_ref[...]).astype(compute_dtype)
    dst_oh = (node_iota == dst_ref[...]).astype(compute_dtype)

    # edge update: e += MLP_ln([x_src, x_dst, e])
    # concat folded into split W1; gather reassociated with W1_src/W1_dst.
    h = (jnp.dot(src_oh, xw_s_sc[...].astype(compute_dtype),
                 preferred_element_type=jnp.float32)
         + jnp.dot(dst_oh, xw_d_sc[...].astype(compute_dtype),
                   preferred_element_type=jnp.float32)
         + mm(e_tile, mp_w_ref[0, 2])
         + mp_b_ref[0, 0])
    h = jnp.maximum(h, 0.0)
    h = mm(h, mp_w_ref[0, 3]) + mp_b_ref[0, 1]
    e_new = e_tile + _layernorm(h, mp_b_ref[0, 2], mp_b_ref[0, 3], c_hidden)
    e_sc[pl.ds(e_off, tile_e), :] = e_new

    # scatter-add over this tile's edges: contract the edge axis on the MXU
    # (no transposed one-hot materialized); padded edges have dst == n_pad and
    # therefore an all-zero one-hot row -> they scatter nowhere.
    agg_sc[...] += lax.dot_general(
        dst_oh, e_new.astype(compute_dtype),
        dimension_numbers=(((0,), (0,)), ((), ())),
        preferred_element_type=jnp.float32)

    # ---- node update after the last edge tile of this layer ----
    @pl.when(t == n_t - 1)
    def _():
        xx = x_sc[...]
        g = (mm(xx, mp_w_ref[0, 4])
             + mm(agg_sc[...], mp_w_ref[0, 5])
             + mp_b_ref[0, 4])
        g = jnp.maximum(g, 0.0)
        g = mm(g, mp_w_ref[0, 6]) + mp_b_ref[0, 5]
        x_sc[...] = xx + _layernorm(g, mp_b_ref[0, 6], mp_b_ref[0, 7], c_hidden)

    # ---- decode + lane-dense store after the very last grid step ----
    @pl.when((l == n_l - 1) & (t == n_t - 1))
    def _():
        h = jnp.maximum(mm(x_sc[...], dec_w1[...]) + dec_b1[...], 0.0)
        xo_ref[...] = mm(h, dec_w2[...]) + dec_b2[...]


# ---------------------------------------------------------------------------
# VMEM budget derived from the actual buffers (clamped to the chip's VMEM)
# ---------------------------------------------------------------------------
def _derive_vmem_limit(n_pad, e_pad, tile_e, in_node_pad, in_edge_pad, w_bytes):
    f32 = 4
    scratch = (4 * n_pad * C_PAD + e_pad * C_PAD) * f32      # x, agg, xw_s/d, e
    blocks = (
        n_pad * in_node_pad * f32                            # x_raw (const block)
        + 2 * tile_e * in_edge_pad * f32                      # ea tile (dbl-buf)
        + 2 * 2 * tile_e * 4                                  # src/dst tiles
        + (in_node_pad + in_edge_pad) * C_PAD * f32           # encoder w1 (f32)
        + 4 * C_PAD * C_PAD * w_bytes                         # enc w2 x2, dec w1/w2
        + 2 * N_MP_W * C_PAD * C_PAD * w_bytes                # mp_w block (dbl-buf)
        + 2 * N_MP_B * C_PAD * f32                            # mp_b block (dbl-buf)
        + 12 * C_PAD * f32                                    # misc bias/gamma/beta
        + n_pad * C_PAD * f32                                 # output block
    )
    need = int(1.5 * (scratch + 2 * blocks))                  # pipeline + margin
    cap = 96 * 1024 * 1024                                    # fine for v5e/v6e
    try:
        # v7x has 64 MiB VMEM per TC -> cap the scoped limit below physical.
        cap = min(cap, int(pltpu.get_tpu_info().vmem_capacity_bytes * 0.85))
    except Exception:
        pass
    return int(min(max(need, 32 * 1024 * 1024), cap))


# ---------------------------------------------------------------------------
# Wrapper: padding, BlockSpecs, pallas_call
# ---------------------------------------------------------------------------
def topk_multiscale_gnn_forward(packed, x, edge_index, pos, edge_attr, *,
                                edge_tile=512):
    del pos  # only consumed by the (skipped) multiscale coarsening branch
    N = x.shape[0]
    E = edge_attr.shape[0]
    hidden = packed["hidden_channels"]
    out_ch = packed["out_channels"]
    n_layers = packed["n_layers"]
    in_node_pad = packed["in_node_pad"]
    in_edge_pad = packed["in_edge_pad"]
    compute_dtype = packed["compute_dtype"]

    n_pad = _round_up(N, 8)
    tile_e = min(_round_up(edge_tile, 8), _round_up(E, 8))
    e_pad = _round_up(E, tile_e)
    n_e_tiles = e_pad // tile_e

    # pad rows; raw channel dims stay at their natural (8-aligned) width.
    # padded edges gather from node 0 and scatter nowhere (dst = n_pad never
    # matches the in-kernel node iota).
    xp = jnp.zeros((n_pad, in_node_pad), jnp.float32).at[:N, :x.shape[1]].set(x)
    eap = jnp.zeros((e_pad, in_edge_pad), jnp.float32).at[
        :E, :edge_attr.shape[1]].set(edge_attr)
    src = jnp.zeros((e_pad, 1), jnp.int32).at[:E, 0].set(edge_index[0].astype(jnp.int32))
    dst = jnp.full((e_pad, 1), n_pad, jnp.int32).at[:E, 0].set(edge_index[1].astype(jnp.int32))

    const = lambda shape: pl.BlockSpec(shape, lambda l, t: (0,) * len(shape))
    edge_vec = pl.BlockSpec((tile_e, 1), lambda l, t: (t, 0))
    # raw edges streamed per tile at l==0 only (clamped to block 0 afterwards)
    ea_spec = pl.BlockSpec((tile_e, in_edge_pad),
                           lambda l, t: (jnp.where(l == 0, t, 0), 0))
    mp_w_spec = pl.BlockSpec((1, N_MP_W, C_PAD, C_PAD), lambda l, t: (l, 0, 0, 0))
    mp_b_spec = pl.BlockSpec((1, N_MP_B, 1, C_PAD), lambda l, t: (l, 0, 0, 0))
    w_full = const((C_PAD, C_PAD))
    b_full = const((1, C_PAD))

    in_specs = [
        const((n_pad, in_node_pad)),     # x (raw)
        ea_spec,                         # edge_attr (raw, per-tile)
        edge_vec, edge_vec,              # src, dst index columns
    ]
    in_specs += [const((in_node_pad, C_PAD)), b_full, w_full, b_full, b_full, b_full]  # node enc
    in_specs += [const((in_edge_pad, C_PAD)), b_full, w_full, b_full, b_full, b_full]  # edge enc
    in_specs += [mp_w_spec, mp_b_spec]                                                 # MP layers
    in_specs += [w_full, b_full, w_full, b_full]                                       # decoder

    kernel = functools.partial(gnn_kernel, c_hidden=hidden, tile_e=tile_e,
                               compute_dtype=compute_dtype)

    w_bytes = jnp.dtype(compute_dtype).itemsize
    vmem_limit = _derive_vmem_limit(n_pad, e_pad, tile_e,
                                    in_node_pad, in_edge_pad, w_bytes)

    x_out_pad = pl.pallas_call(
        kernel,
        out_shape=jax.ShapeDtypeStruct((n_pad, C_PAD), jnp.float32),
        grid_spec=pltpu.PrefetchScalarGridSpec(
            num_scalar_prefetch=0,
            grid=(n_layers, n_e_tiles),
            in_specs=in_specs,
            out_specs=pl.BlockSpec((n_pad, C_PAD), lambda l, t: (0, 0)),
            scratch_shapes=[
                pltpu.VMEM((n_pad, C_PAD), jnp.float32),   # x, resident across layers
                pltpu.VMEM((e_pad, C_PAD), jnp.float32),   # e, resident across layers
                pltpu.VMEM((n_pad, C_PAD), jnp.float32),   # per-layer scatter accumulator
                pltpu.VMEM((n_pad, C_PAD), jnp.float32),   # x @ W1_src (per layer)
                pltpu.VMEM((n_pad, C_PAD), jnp.float32),   # x @ W1_dst (per layer)
            ]),
        compiler_params=pltpu.CompilerParams(
            dimension_semantics=("arbitrary", "arbitrary"),
            vmem_limit_bytes=vmem_limit),
    )(xp, eap, src, dst,
      *packed["enc_node"], *packed["enc_edge"],
      packed["mp_w"], packed["mp_b"],
      *packed["decoder"])

    mask = jnp.zeros((N,), jnp.float32)   # max_level_topk = 0 -> all zeros
    return x_out_pad[:N, :out_ch], mask


# ---------------------------------------------------------------------------
# Parameter init (PyTorch-style Linear init, LayerNorm = 1/0) + packing
# ---------------------------------------------------------------------------
def init_linear(key, fan_in, fan_out):
    kw, kb = jax.random.split(key)
    bound = 1.0 / np.sqrt(fan_in)
    w = jax.random.uniform(kw, (fan_in, fan_out), jnp.float32, -bound, bound)
    b = jax.random.uniform(kb, (1, fan_out), jnp.float32, -bound, bound)
    return w, b


def init_mlp(key, in_ch, hid, out_ch, layer_norm):
    k1, k2 = jax.random.split(key)
    w1, b1 = init_linear(k1, in_ch, hid)
    w2, b2 = init_linear(k2, hid, out_ch)
    p = {"w1": w1, "b1": b1, "w2": w2, "b2": b2}
    if layer_norm:
        p["gamma"] = jnp.ones((1, out_ch), jnp.float32)
        p["beta"] = jnp.zeros((1, out_ch), jnp.float32)
    return p


def init_params(key, in_node, in_edge, hidden, out_node, n_mp_layers_total):
    keys = jax.random.split(key, 3 + n_mp_layers_total)
    params = {
        "node_encoder": init_mlp(keys[0], in_node, hidden, hidden, True),
        "edge_encoder": init_mlp(keys[1], in_edge, hidden, hidden, True),
        "node_decoder": init_mlp(keys[2], hidden, hidden, out_node, False),
        "mp_layers": [],
    }
    for i in range(n_mp_layers_total):
        ke, kn = jax.random.split(keys[3 + i])
        params["mp_layers"].append({
            "edge": init_mlp(ke, 3 * hidden, hidden, hidden, True),
            "node": init_mlp(kn, 2 * hidden, hidden, hidden, True),
        })
    return params


def pack_params(params, compute_dtype=jnp.bfloat16, c_pad=C_PAD):
    """Zero-pad hidden channel dims to 128 lanes, keep raw input channel dims
    at an 8-aligned natural width, pre-split the concat weights, and stack the
    per-layer MP weights into two tensors.  Hidden-size weight matrices are
    stored in `compute_dtype`; biases / LayerNorm params / raw-input weights
    stay f32."""
    wdt = compute_dtype

    def pmat(w, r_pad, dtype):
        return jnp.zeros((r_pad, c_pad), dtype).at[
            :w.shape[0], :w.shape[1]].set(w.astype(dtype))

    def pvec(b):
        b = b.reshape(1, -1)
        return jnp.zeros((1, c_pad), jnp.float32).at[:, :b.shape[1]].set(b)

    in_node = params["node_encoder"]["w1"].shape[0]
    in_edge = params["edge_encoder"]["w1"].shape[0]
    in_node_pad = max(8, _round_up(in_node, 8))
    in_edge_pad = max(8, _round_up(in_edge, 8))
    C = params["node_encoder"]["w2"].shape[1]

    def pack_encoder(p, in_pad):
        return (pmat(p["w1"], in_pad, jnp.float32), pvec(p["b1"]),
                pmat(p["w2"], c_pad, wdt), pvec(p["b2"]),
                pvec(p["gamma"]), pvec(p["beta"]))

    mp_w, mp_b = [], []
    for mp in params["mp_layers"]:
        pe, pn = mp["edge"], mp["node"]
        w1e, w1n = pe["w1"], pn["w1"]
        ws = [w1e[:C], w1e[C:2 * C], w1e[2 * C:], pe["w2"],
              w1n[:C], w1n[C:], pn["w2"]]
        mp_w.append(jnp.stack([pmat(w, c_pad, wdt) for w in ws], axis=0))
        bs = [pe["b1"], pe["b2"], pe["gamma"], pe["beta"],
              pn["b1"], pn["b2"], pn["gamma"], pn["beta"]]
        mp_b.append(jnp.stack([pvec(b) for b in bs], axis=0))

    dec = params["node_decoder"]
    return {
        "enc_node": pack_encoder(params["node_encoder"], in_node_pad),
        "enc_edge": pack_encoder(params["edge_encoder"], in_edge_pad),
        "mp_w": jnp.stack(mp_w, axis=0),     # (L, 7, C_PAD, C_PAD)
        "mp_b": jnp.stack(mp_b, axis=0),     # (L, 8, 1, C_PAD)
        "decoder": (pmat(dec["w1"], c_pad, wdt), pvec(dec["b1"]),
                    pmat(dec["w2"], c_pad, wdt), pvec(dec["b2"])),
        "hidden_channels": int(C),
        "out_channels": int(dec["w2"].shape[1]),
        "n_layers": len(params["mp_layers"]),
        "in_node_pad": in_node_pad,
        "in_edge_pad": in_edge_pad,
        "compute_dtype": compute_dtype,
    }


# ---------------------------------------------------------------------------
# Pure-JAX reference (for correctness check)
# ---------------------------------------------------------------------------
def _ref_mlp(x, w1, b1, w2, b2, gamma=None, beta=None):
    h = jnp.maximum(x @ w1 + b1, 0.0)
    h = h @ w2 + b2
    if gamma is not None:
        mu = h.mean(-1, keepdims=True)
        var = ((h - mu) ** 2).mean(-1, keepdims=True)
        h = (h - mu) / jnp.sqrt(var + LN_EPS) * gamma + beta
    return h


def _ref_forward(params, x, edge_index, pos, edge_attr):
    del pos
    N = x.shape[0]
    mask = jnp.zeros((N,), jnp.float32)
    x = _ref_mlp(x, **params["node_encoder"])
    e = _ref_mlp(edge_attr, **params["edge_encoder"])
    src, dst = edge_index[0], edge_index[1]
    for mp in params["mp_layers"]:
        cat_e = jnp.concatenate([x[src], x[dst], e], axis=1)
        e = e + _ref_mlp(cat_e, **mp["edge"])
        agg = jax.ops.segment_sum(e, dst, num_segments=N)
        x = x + _ref_mlp(jnp.concatenate([x, agg], axis=1), **mp["node"])
    x = _ref_mlp(x, **params["node_decoder"])
    return x, mask


# ---------------------------------------------------------------------------
if __name__ == "__main__":
    # hyper-parameters (see header: max_level_mmp=0, max_level_topk=0, pool_ratios=[])
    input_node_channels = 4
    input_edge_channels = 4
    hidden_channels = 32
    output_node_channels = 4
    n_mlp_hidden_layers = 0
    n_mmp_layers = 1
    n_messagePassing_layers = 2
    n_mp_total = n_mmp_layers * n_messagePassing_layers

    N, E = 16, 32
    key = jax.random.PRNGKey(0)
    k_x, k_e, k_pos, k_ei, k_par = jax.random.split(key, 5)

    x_in = jax.random.normal(k_x, (N, input_node_channels), jnp.float32)
    edge_attr_in = jax.random.normal(k_e, (E, input_edge_channels), jnp.float32)
    pos_in = jax.random.normal(k_pos, (N, 2), jnp.float32)
    edge_index = jax.random.randint(k_ei, (2, E), 0, N, dtype=jnp.int32)

    params = init_params(k_par, input_node_channels, input_edge_channels,
                         hidden_channels, output_node_channels, n_mp_total)
    x_ref, mask_ref = _ref_forward(params, x_in, edge_index, pos_in, edge_attr_in)

    # 1) fp32 matmul path with small tiles -> exercises multi-tile pipelining
    #    and the accumulator / per-tile-encode paths; tight fp32 agreement.
    packed_f32 = pack_params(params, compute_dtype=jnp.float32)
    x_out, mask_out = topk_multiscale_gnn_forward(
        packed_f32, x_in, edge_index, pos_in, edge_attr_in, edge_tile=16)
    jax.block_until_ready((x_out, mask_out))
    assert x_out.shape == (N, output_node_channels)
    assert mask_out.shape == (N,)
    np.testing.assert_allclose(np.asarray(x_out), np.asarray(x_ref), rtol=1e-4, atol=1e-4)
    np.testing.assert_allclose(np.asarray(mask_out), np.asarray(mask_ref), rtol=0, atol=0)

    # 2) production default: bf16 matmul operands (f32 accumulation), large tile.
    packed_bf16 = pack_params(params, compute_dtype=jnp.bfloat16)
    x_bf, _ = topk_multiscale_gnn_forward(
        packed_bf16, x_in, edge_index, pos_in, edge_attr_in)
    jax.block_until_ready(x_bf)
    np.testing.assert_allclose(np.asarray(x_bf), np.asarray(x_ref), rtol=5e-2, atol=5e-2)

    print("KERNEL_OK")
</pallas_src>

<mosaic_0001>
module attributes {stable_mosaic.version = 11 : i64} {
  func.func @gnn_kernel(%arg0: i32, %arg1: i32, %arg2: memref<16x8xf32, #tpu.memory_space<vmem>>, %arg3: memref<16x8xf32, #tpu.memory_space<vmem>>, %arg4: memref<16x1xi32, #tpu.memory_space<vmem>>, %arg5: memref<16x1xi32, #tpu.memory_space<vmem>>, %arg6: memref<8x128xf32, #tpu.memory_space<vmem>>, %arg7: memref<1x128xf32, #tpu.memory_space<vmem>>, %arg8: memref<128x128xf32, #tpu.memory_space<vmem>>, %arg9: memref<1x128xf32, #tpu.memory_space<vmem>>, %arg10: memref<1x128xf32, #tpu.memory_space<vmem>>, %arg11: memref<1x128xf32, #tpu.memory_space<vmem>>, %arg12: memref<8x128xf32, #tpu.memory_space<vmem>>, %arg13: memref<1x128xf32, #tpu.memory_space<vmem>>, %arg14: memref<128x128xf32, #tpu.memory_space<vmem>>, %arg15: memref<1x128xf32, #tpu.memory_space<vmem>>, %arg16: memref<1x128xf32, #tpu.memory_space<vmem>>, %arg17: memref<1x128xf32, #tpu.memory_space<vmem>>, %arg18: memref<1x7x128x128xf32, #tpu.memory_space<vmem>>, %arg19: memref<1x8x1x128xf32, #tpu.memory_space<vmem>>, %arg20: memref<128x128xf32, #tpu.memory_space<vmem>>, %arg21: memref<1x128xf32, #tpu.memory_space<vmem>>, %arg22: memref<128x128xf32, #tpu.memory_space<vmem>>, %arg23: memref<1x128xf32, #tpu.memory_space<vmem>>, %arg24: memref<16x128xf32, #tpu.memory_space<vmem>>, %arg25: memref<16x128xf32, #tpu.memory_space<vmem>>, %arg26: memref<32x128xf32, #tpu.memory_space<vmem>>, %arg27: memref<16x128xf32, #tpu.memory_space<vmem>>, %arg28: memref<16x128xf32, #tpu.memory_space<vmem>>, %arg29: memref<16x128xf32, #tpu.memory_space<vmem>>) attributes {dimension_semantics = [#tpu.dimension_semantics<arbitrary>, #tpu.dimension_semantics<arbitrary>], iteration_bounds = array<i64: 2, 2>, scalar_prefetch = 0 : i64, scratch_operands = 5 : i64, tpu.core_type = #tpu.core_type<tc>, window_params = [{pipeline_mode = #tpu.pipeline_mode<synchronous>, transform_indices = @transform_0, window_bounds = array<i64: 16, 8>}, {transform_indices = @transform_1, window_bounds = array<i64: 16, 8>}, {transform_indices = @transform_2, window_bounds = array<i64: 16, 1>}, {transform_indices = @transform_3, window_bounds = array<i64: 16, 1>}, {pipeline_mode = #tpu.pipeline_mode<synchronous>, transform_indices = @transform_4, window_bounds = array<i64: 8, 128>}, {pipeline_mode = #tpu.pipeline_mode<synchronous>, transform_indices = @transform_5, window_bounds = array<i64: 1, 128>}, {pipeline_mode = #tpu.pipeline_mode<synchronous>, transform_indices = @transform_6, window_bounds = array<i64: 128, 128>}, {pipeline_mode = #tpu.pipeline_mode<synchronous>, transform_indices = @transform_7, window_bounds = array<i64: 1, 128>}, {pipeline_mode = #tpu.pipeline_mode<synchronous>, transform_indices = @transform_8, window_bounds = array<i64: 1, 128>}, {pipeline_mode = #tpu.pipeline_mode<synchronous>, transform_indices = @transform_9, window_bounds = array<i64: 1, 128>}, {pipeline_mode = #tpu.pipeline_mode<synchronous>, transform_indices = @transform_10, window_bounds = array<i64: 8, 128>}, {pipeline_mode = #tpu.pipeline_mode<synchronous>, transform_indices = @transform_11, window_bounds = array<i64: 1, 128>}, {pipeline_mode = #tpu.pipeline_mode<synchronous>, transform_indices = @transform_12, window_bounds = array<i64: 128, 128>}, {pipeline_mode = #tpu.pipeline_mode<synchronous>, transform_indices = @transform_13, window_bounds = array<i64: 1, 128>}, {pipeline_mode = #tpu.pipeline_mode<synchronous>, transform_indices = @transform_14, window_bounds = array<i64: 1, 128>}, {pipeline_mode = #tpu.pipeline_mode<synchronous>, transform_indices = @transform_15, window_bounds = array<i64: 1, 128>}, {transform_indices = @transform_16, window_bounds = array<i64: 1, 7, 128, 128>}, {transform_indices = @transform_17, window_bounds = array<i64: 1, 8, 1, 128>}, {pipeline_mode = #tpu.pipeline_mode<synchronous>, transform_indices = @transform_18, window_bounds = array<i64: 128, 128>}, {pipeline_mode = #tpu.pipeline_mode<synchronous>, transform_indices = @transform_19, window_bounds = array<i64: 1, 128>}, {pipeline_mode = #tpu.pipeline_mode<synchronous>, transform_indices = @transform_20, window_bounds = array<i64: 128, 128>}, {pipeline_mode = #tpu.pipeline_mode<synchronous>, transform_indices = @transform_21, window_bounds = array<i64: 1, 128>}, {pipeline_mode = #tpu.pipeline_mode<synchronous>, transform_indices = @transform_22, window_bounds = array<i64: 16, 128>}]} {
    %c0_i32 = arith.constant 0 : i32
    %0 = arith.cmpi eq, %arg0, %c0_i32 : i32
    %c0_i32_0 = arith.constant 0 : i32
    %1 = arith.cmpi eq, %arg1, %c0_i32_0 : i32
    %2 = arith.andi %0, %1 : i1
    %3 = arith.extui %2 : i1 to i32
    %c0_i32_1 = arith.constant 0 : i32
    %4 = arith.cmpi ne, %3, %c0_i32_1 : i32
    scf.if %4 {
      %c0_55 = arith.constant 0 : index
      %c0_56 = arith.constant 0 : index
      %94 = vector.load %arg2[%c0_55, %c0_56] : memref<16x8xf32, #tpu.memory_space<vmem>>, vector<16x8xf32>
      %c0_57 = arith.constant 0 : index
      %c0_58 = arith.constant 0 : index
      %95 = vector.load %arg6[%c0_57, %c0_58] : memref<8x128xf32, #tpu.memory_space<vmem>>, vector<8x128xf32>
      %cst_59 = arith.constant dense<0.000000e+00> : vector<16x128xf32>
      %96 = tpu.matmul %94, %95, %cst_59 {dimension_numbers = #tpu.dot_dimension_numbers<[1], [0], [0], [1], [0, 0, 1, 1], [], []>} : vector<16x8xf32>, vector<8x128xf32>, vector<16x128xf32> -> vector<16x128xf32>
      %c0_60 = arith.constant 0 : index
      %c0_61 = arith.constant 0 : index
      %97 = vector.load %arg7[%c0_60, %c0_61] : memref<1x128xf32, #tpu.memory_space<vmem>>, vector<1x128xf32>
      %98 = vector.broadcast %97 : vector<1x128xf32> to vector<16x128xf32>
      %99 = arith.addf %96, %98 : vector<16x128xf32>
      %cst_62 = arith.constant 0.000000e+00 : f32
      %100 = vector.broadcast %cst_62 : f32 to vector<16x128xf32>
      %101 = arith.maximumf %99, %100 : vector<16x128xf32>
      %c0_63 = arith.constant 0 : index
      %c0_64 = arith.constant 0 : index
      %102 = vector.load %arg8[%c0_63, %c0_64] : memref<128x128xf32, #tpu.memory_space<vmem>>, vector<128x128xf32>
      %cst_65 = arith.constant dense<0.000000e+00> : vector<16x128xf32>
      %103 = tpu.matmul %101, %102, %cst_65 {dimension_numbers = #tpu.dot_dimension_numbers<[1], [0], [0], [1], [0, 0, 1, 1], [], []>} : vector<16x128xf32>, vector<128x128xf32>, vector<16x128xf32> -> vector<16x128xf32>
      %c0_66 = arith.constant 0 : index
      %c0_67 = arith.constant 0 : index
      %104 = vector.load %arg9[%c0_66, %c0_67] : memref<1x128xf32, #tpu.memory_space<vmem>>, vector<1x128xf32>
      %105 = vector.broadcast %104 : vector<1x128xf32> to vector<16x128xf32>
      %106 = arith.addf %103, %105 : vector<16x128xf32>
      %c0_68 = arith.constant 0 : index
      %c0_69 = arith.constant 0 : index
      %107 = vector.load %arg10[%c0_68, %c0_69] : memref<1x128xf32, #tpu.memory_space<vmem>>, vector<1x128xf32>
      %c0_70 = arith.constant 0 : index
      %c0_71 = arith.constant 0 : index
      %108 = vector.load %arg11[%c0_70, %c0_71] : memref<1x128xf32, #tpu.memory_space<vmem>>, vector<1x128xf32>
      %cst_72 = arith.constant dense<0.000000e+00> : vector<16xf32>
      %109 = vector.multi_reduction <add>, %106, %cst_72 [1] : vector<16x128xf32> to vector<16xf32>
      %110 = vector.shape_cast %109 : vector<16xf32> to vector<16x1xf32>
      %cst_73 = arith.constant 3.125000e-02 : f32
      %111 = vector.broadcast %cst_73 : f32 to vector<16x1xf32>
      %112 = arith.mulf %110, %111 : vector<16x1xf32>
      %113 = tpu.iota {dimensions = array<i32: 1>} : vector<16x128xi32>
      %c32_i32_74 = arith.constant 32 : i32
      %114 = vector.broadcast %c32_i32_74 : i32 to vector<16x128xi32>
      %115 = arith.cmpi slt, %113, %114 : vector<16x128xi32>
      %116 = vector.broadcast %112 : vector<16x1xf32> to vector<16x128xf32>
      %117 = arith.subf %106, %116 : vector<16x128xf32>
      %cst_75 = arith.constant 0.000000e+00 : f32
      %118 = vector.broadcast %cst_75 : f32 to vector<16x128xf32>
      %119 = arith.select %115, %117, %118 : vector<16x128xi1>, vector<16x128xf32>
      %120 = arith.mulf %119, %119 : vector<16x128xf32>
      %cst_76 = arith.constant dense<0.000000e+00> : vector<16xf32>
      %121 = vector.multi_reduction <add>, %120, %cst_76 [1] : vector<16x128xf32> to vector<16xf32>
      %122 = vector.shape_cast %121 : vector<16xf32> to vector<16x1xf32>
      %cst_77 = arith.constant 3.125000e-02 : f32
      %123 = vector.broadcast %cst_77 : f32 to vector<16x1xf32>
      %124 = arith.mulf %122, %123 : vector<16x1xf32>
      %125 = vector.broadcast %112 : vector<16x1xf32> to vector<16x128xf32>
      %126 = arith.subf %106, %125 : vector<16x128xf32>
      %cst_78 = arith.constant 9.99999974E-6 : f32
      %127 = vector.broadcast %cst_78 : f32 to vector<16x1xf32>
      %128 = arith.addf %124, %127 : vector<16x1xf32>
      %129 = math.rsqrt %128 : vector<16x1xf32>
      %130 = vector.broadcast %129 : vector<16x1xf32> to vector<16x128xf32>
      %131 = arith.mulf %126, %130 : vector<16x128xf32>
      %132 = vector.broadcast %107 : vector<1x128xf32> to vector<16x128xf32>
      %133 = arith.mulf %131, %132 : vector<16x128xf32>
      %134 = vector.broadcast %108 : vector<1x128xf32> to vector<16x128xf32>
      %135 = arith.addf %133, %134 : vector<16x128xf32>
      %c0_79 = arith.constant 0 : index
      %c0_80 = arith.constant 0 : index
      %136 = vector.load %arg25[%c0_79, %c0_80] : memref<16x128xf32, #tpu.memory_space<vmem>>, vector<16x128xf32>
      tpu.vector_store %arg25[%c0_79, %c0_80], %135 {strides = array<i32>} : memref<16x128xf32, #tpu.memory_space<vmem>>, vector<16x128xf32>,
    } else {
    }
    %c16_i32 = arith.constant 16 : i32
    %5 = arith.muli %arg1, %c16_i32 : i32
    %6 = tpu.assume_multiple %5, 16 : i32
    %c0_i32_2 = arith.constant 0 : i32
    %7 = arith.cmpi eq, %arg0, %c0_i32_2 : i32
    %8 = arith.extui %7 : i1 to i32
    %c0_i32_3 = arith.constant 0 : i32
    %9 = arith.cmpi ne, %8, %c0_i32_3 : i32
    scf.if %9 {
      %c0_55 = arith.constant 0 : index
      %c0_56 = arith.constant 0 : index
      %94 = vector.load %arg3[%c0_55, %c0_56] : memref<16x8xf32, #tpu.memory_space<vmem>>, vector<16x8xf32>
      %c0_57 = arith.constant 0 : index
      %c0_58 = arith.constant 0 : index
      %95 = vector.load %arg12[%c0_57, %c0_58] : memref<8x128xf32, #tpu.memory_space<vmem>>, vector<8x128xf32>
      %cst_59 = arith.constant dense<0.000000e+00> : vector<16x128xf32>
      %96 = tpu.matmul %94, %95, %cst_59 {dimension_numbers = #tpu.dot_dimension_numbers<[1], [0], [0], [1], [0, 0, 1, 1], [], []>} : vector<16x8xf32>, vector<8x128xf32>, vector<16x128xf32> -> vector<16x128xf32>
      %c0_60 = arith.constant 0 : index
      %c0_61 = arith.constant 0 : index
      %97 = vector.load %arg13[%c0_60, %c0_61] : memref<1x128xf32, #tpu.memory_space<vmem>>, vector<1x128xf32>
      %98 = vector.broadcast %97 : vector<1x128xf32> to vector<16x128xf32>
      %99 = arith.addf %96, %98 : vector<16x128xf32>
      %cst_62 = arith.constant 0.000000e+00 : f32
      %100 = vector.broadcast %cst_62 : f32 to vector<16x128xf32>
      %101 = arith.maximumf %99, %100 : vector<16x128xf32>
      %c0_63 = arith.constant 0 : index
      %c0_64 = arith.constant 0 : index
      %102 = vector.load %arg14[%c0_63, %c0_64] : memref<128x128xf32, #tpu.memory_space<vmem>>, vector<128x128xf32>
      %cst_65 = arith.constant dense<0.000000e+00> : vector<16x128xf32>
      %103 = tpu.matmul %101, %102, %cst_65 {dimension_numbers = #tpu.dot_dimension_numbers<[1], [0], [0], [1], [0, 0, 1, 1], [], []>} : vector<16x128xf32>, vector<128x128xf32>, vector<16x128xf32> -> vector<16x128xf32>
      %c0_66 = arith.constant 0 : index
      %c0_67 = arith.constant 0 : index
      %104 = vector.load %arg15[%c0_66, %c0_67] : memref<1x128xf32, #tpu.memory_space<vmem>>, vector<1x128xf32>
      %105 = vector.broadcast %104 : vector<1x128xf32> to vector<16x128xf32>
      %106 = arith.addf %103, %105 : vector<16x128xf32>
      %c0_68 = arith.constant 0 : index
      %c0_69 = arith.constant 0 : index
      %107 = vector.load %arg16[%c0_68, %c0_69] : memref<1x128xf32, #tpu.memory_space<vmem>>, vector<1x128xf32>
      %c0_70 = arith.constant 0 : index
      %c0_71 = arith.constant 0 : index
      %108 = vector.load %arg17[%c0_70, %c0_71] : memref<1x128xf32, #tpu.memory_space<vmem>>, vector<1x128xf32>
      %cst_72 = arith.constant dense<0.000000e+00> : vector<16xf32>
      %109 = vector.multi_reduction <add>, %106, %cst_72 [1] : vector<16x128xf32> to vector<16xf32>
      %110 = vector.shape_cast %109 : vector<16xf32> to vector<16x1xf32>
      %cst_73 = arith.constant 3.125000e-02 : f32
      %111 = vector.broadcast %cst_73 : f32 to vector<16x1xf32>
      %112 = arith.mulf %110, %111 : vector<16x1xf32>
      %113 = tpu.iota {dimensions = array<i32: 1>} : vector<16x128xi32>
      %c32_i32_74 = arith.constant 32 : i32
      %114 = vector.broadcast %c32_i32_74 : i32 to vector<16x128xi32>
      %115 = arith.cmpi slt, %113, %114 : vector<16x128xi32>
      %116 = vector.broadcast %112 : vector<16x1xf32> to vector<16x128xf32>
      %117 = arith.subf %106, %116 : vector<16x128xf32>
      %cst_75 = arith.constant 0.000000e+00 : f32
      %118 = vector.broadcast %cst_75 : f32 to vector<16x128xf32>
      %119 = arith.select %115, %117, %118 : vector<16x128xi1>, vector<16x128xf32>
      %120 = arith.mulf %119, %119 : vector<16x128xf32>
      %cst_76 = arith.constant dense<0.000000e+00> : vector<16xf32>
      %121 = vector.multi_reduction <add>, %120, %cst_76 [1] : vector<16x128xf32> to vector<16xf32>
      %122 = vector.shape_cast %121 : vector<16xf32> to vector<16x1xf32>
      %cst_77 = arith.constant 3.125000e-02 : f32
      %123 = vector.broadcast %cst_77 : f32 to vector<16x1xf32>
      %124 = arith.mulf %122, %123 : vector<16x1xf32>
      %125 = vector.broadcast %112 : vector<16x1xf32> to vector<16x128xf32>
      %126 = arith.subf %106, %125 : vector<16x128xf32>
      %cst_78 = arith.constant 9.99999974E-6 : f32
      %127 = vector.broadcast %cst_78 : f32 to vector<16x1xf32>
      %128 = arith.addf %124, %127 : vector<16x1xf32>
      %129 = math.rsqrt %128 : vector<16x1xf32>
      %130 = vector.broadcast %129 : vector<16x1xf32> to vector<16x128xf32>
      %131 = arith.mulf %126, %130 : vector<16x128xf32>
      %132 = vector.broadcast %107 : vector<1x128xf32> to vector<16x128xf32>
      %133 = arith.mulf %131, %132 : vector<16x128xf32>
      %134 = vector.broadcast %108 : vector<1x128xf32> to vector<16x128xf32>
      %135 = arith.addf %133, %134 : vector<16x128xf32>
      %136 = arith.index_cast %6 : i32 to index
      %c0_79 = arith.constant 0 : index
      %137 = vector.load %arg26[%136, %c0_79] : memref<32x128xf32, #tpu.memory_space<vmem>>, vector<16x128xf32>
      tpu.vector_store %arg26[%136, %c0_79], %135 {strides = array<i32>} : memref<32x128xf32, #tpu.memory_space<vmem>>, vector<16x128xf32>,
    } else {
    }
    %c0_i32_4 = arith.constant 0 : i32
    %10 = arith.cmpi eq, %arg1, %c0_i32_4 : i32
    %11 = arith.extui %10 : i1 to i32
    %c0_i32_5 = arith.constant 0 : i32
    %12 = arith.cmpi ne, %11, %c0_i32_5 : i32
    scf.if %12 {
      %cst_55 = arith.constant 0.000000e+00 : f32
      %94 = vector.broadcast %cst_55 : f32 to vector<16x128xf32>
      %c0_56 = arith.constant 0 : index
      %c0_57 = arith.constant 0 : index
      %95 = vector.load %arg27[%c0_56, %c0_57] : memref<16x128xf32, #tpu.memory_space<vmem>>, vector<16x128xf32>
      tpu.vector_store %arg27[%c0_56, %c0_57], %94 {strides = array<i32>} : memref<16x128xf32, #tpu.memory_space<vmem>>, vector<16x128xf32>,
      %c0_58 = arith.constant 0 : index
      %c0_59 = arith.constant 0 : index
      %96 = vector.load %arg25[%c0_58, %c0_59] : memref<16x128xf32, #tpu.memory_space<vmem>>, vector<16x128xf32>
      %c0_60 = arith.constant 0 : index
      %c0_61 = arith.constant 0 : index
      %c0_62 = arith.constant 0 : index
      %c0_63 = arith.constant 0 : index
      %97 = vector.load %arg18[%c0_60, %c0_61, %c0_62, %c0_63] : memref<1x7x128x128xf32, #tpu.memory_space<vmem>>, vector<1x1x128x128xf32>
      %98 = vector.shape_cast %97 : vector<1x1x128x128xf32> to vector<128x128xf32>
      %cst_64 = arith.constant dense<0.000000e+00> : vector<16x128xf32>
      %99 = tpu.matmul %96, %98, %cst_64 {dimension_numbers = #tpu.dot_dimension_numbers<[1], [0], [0], [1], [0, 0, 1, 1], [], []>} : vector<16x128xf32>, vector<128x128xf32>, vector<16x128xf32> -> vector<16x128xf32>
      %c0_65 = arith.constant 0 : index
      %c0_66 = arith.constant 0 : index
      %100 = vector.load %arg28[%c0_65, %c0_66] : memref<16x128xf32, #tpu.memory_space<vmem>>, vector<16x128xf32>
      tpu.vector_store %arg28[%c0_65, %c0_66], %99 {strides = array<i32>} : memref<16x128xf32, #tpu.memory_space<vmem>>, vector<16x128xf32>,
      %c0_67 = arith.constant 0 : index
      %c0_68 = arith.constant 0 : index
      %101 = vector.load %arg25[%c0_67, %c0_68] : memref<16x128xf32, #tpu.memory_space<vmem>>, vector<16x128xf32>
      %c0_69 = arith.constant 0 : index
      %c1_70 = arith.constant 1 : index
      %c0_71 = arith.constant 0 : index
      %c0_72 = arith.constant 0 : index
      %102 = vector.load %arg18[%c0_69, %c1_70, %c0_71, %c0_72] : memref<1x7x128x128xf32, #tpu.memory_space<vmem>>, vector<1x1x128x128xf32>
      %103 = vector.shape_cast %102 : vector<1x1x128x128xf32> to vector<128x128xf32>
      %cst_73 = arith.constant dense<0.000000e+00> : vector<16x128xf32>
      %104 = tpu.matmul %101, %103, %cst_73 {dimension_numbers = #tpu.dot_dimension_numbers<[1], [0], [0], [1], [0, 0, 1, 1], [], []>} : vector<16x128xf32>, vector<128x128xf32>, vector<16x128xf32> -> vector<16x128xf32>
      %c0_74 = arith.constant 0 : index
      %c0_75 = arith.constant 0 : index
      %105 = vector.load %arg29[%c0_74, %c0_75] : memref<16x128xf32, #tpu.memory_space<vmem>>, vector<16x128xf32>
      tpu.vector_store %arg29[%c0_74, %c0_75], %104 {strides = array<i32>} : memref<16x128xf32, #tpu.memory_space<vmem>>, vector<16x128xf32>,
    } else {
    }
    %13 = arith.index_cast %6 : i32 to index
    %c0 = arith.constant 0 : index
    %14 = vector.load %arg26[%13, %c0] : memref<32x128xf32, #tpu.memory_space<vmem>>, vector<16x128xf32>
    %15 = tpu.iota {dimensions = array<i32: 1>} : vector<16x16xi32>
    %c0_6 = arith.constant 0 : index
    %c0_7 = arith.constant 0 : index
    %16 = vector.load %arg4[%c0_6, %c0_7] : memref<16x1xi32, #tpu.memory_space<vmem>>, vector<16x1xi32>
    %17 = vector.broadcast %16 : vector<16x1xi32> to vector<16x16xi32>
    %18 = arith.cmpi eq, %15, %17 : vector<16x16xi32>
    %19 = arith.extui %18 : vector<16x16xi1> to vector<16x16xi32>
    %20 = arith.sitofp %19 : vector<16x16xi32> to vector<16x16xf32>
    %c0_8 = arith.constant 0 : index
    %c0_9 = arith.constant 0 : index
    %21 = vector.load %arg5[%c0_8, %c0_9] : memref<16x1xi32, #tpu.memory_space<vmem>>, vector<16x1xi32>
    %22 = vector.broadcast %21 : vector<16x1xi32> to vector<16x16xi32>
    %23 = arith.cmpi eq, %15, %22 : vector<16x16xi32>
    %24 = arith.extui %23 : vector<16x16xi1> to vector<16x16xi32>
    %25 = arith.sitofp %24 : vector<16x16xi32> to vector<16x16xf32>
    %c0_10 = arith.constant 0 : index
    %c0_11 = arith.constant 0 : index
    %26 = vector.load %arg28[%c0_10, %c0_11] : memref<16x128xf32, #tpu.memory_space<vmem>>, vector<16x128xf32>
    %cst = arith.constant dense<0.000000e+00> : vector<16x128xf32>
    %27 = tpu.matmul %20, %26, %cst {dimension_numbers = #tpu.dot_dimension_numbers<[1], [0], [0], [1], [0, 0, 1, 1], [], []>} : vector<16x16xf32>, vector<16x128xf32>, vector<16x128xf32> -> vector<16x128xf32>
    %c0_12 = arith.constant 0 : index
    %c0_13 = arith.constant 0 : index
    %28 = vector.load %arg29[%c0_12, %c0_13] : memref<16x128xf32, #tpu.memory_space<vmem>>, vector<16x128xf32>
    %cst_14 = arith.constant dense<0.000000e+00> : vector<16x128xf32>
    %29 = tpu.matmul %25, %28, %cst_14 {dimension_numbers = #tpu.dot_dimension_numbers<[1], [0], [0], [1], [0, 0, 1, 1], [], []>} : vector<16x16xf32>, vector<16x128xf32>, vector<16x128xf32> -> vector<16x128xf32>
    %30 = arith.addf %27, %29 : vector<16x128xf32>
    %c0_15 = arith.constant 0 : index
    %c2 = arith.constant 2 : index
    %c0_16 = arith.constant 0 : index
    %c0_17 = arith.constant 0 : index
    %31 = vector.load %arg18[%c0_15, %c2, %c0_16, %c0_17] : memref<1x7x128x128xf32, #tpu.memory_space<vmem>>, vector<1x1x128x128xf32>
    %32 = vector.shape_cast %31 : vector<1x1x128x128xf32> to vector<128x128xf32>
    %cst_18 = arith.constant dense<0.000000e+00> : vector<16x128xf32>
    %33 = tpu.matmul %14, %32, %cst_18 {dimension_numbers = #tpu.dot_dimension_numbers<[1], [0], [0], [1], [0, 0, 1, 1], [], []>} : vector<16x128xf32>, vector<128x128xf32>, vector<16x128xf32> -> vector<16x128xf32>
    %34 = arith.addf %30, %33 : vector<16x128xf32>
    %c0_19 = arith.constant 0 : index
    %c0_20 = arith.constant 0 : index
    %c0_21 = arith.constant 0 : index
    %c0_22 = arith.constant 0 : index
    %35 = vector.load %arg19[%c0_19, %c0_20, %c0_21, %c0_22] : memref<1x8x1x128xf32, #tpu.memory_space<vmem>>, vector<1x1x1x128xf32>
    %36 = vector.shape_cast %35 : vector<1x1x1x128xf32> to vector<1x128xf32>
    %37 = vector.broadcast %36 : vector<1x128xf32> to vector<16x128xf32>
    %38 = arith.addf %34, %37 : vector<16x128xf32>
    %cst_23 = arith.constant 0.000000e+00 : f32
    %39 = vector.broadcast %cst_23 : f32 to vector<16x128xf32>
    %40 = arith.maximumf %38, %39 : vector<16x128xf32>
    %c0_24 = arith.constant 0 : index
    %c3 = arith.constant 3 : index
    %c0_25 = arith.constant 0 : index
    %c0_26 = arith.constant 0 : index
    %41 = vector.load %arg18[%c0_24, %c3, %c0_25, %c0_26] : memref<1x7x128x128xf32, #tpu.memory_space<vmem>>, vector<1x1x128x128xf32>
    %42 = vector.shape_cast %41 : vector<1x1x128x128xf32> to vector<128x128xf32>
    %cst_27 = arith.constant dense<0.000000e+00> : vector<16x128xf32>
    %43 = tpu.matmul %40, %42, %cst_27 {dimension_numbers = #tpu.dot_dimension_numbers<[1], [0], [0], [1], [0, 0, 1, 1], [], []>} : vector<16x128xf32>, vector<128x128xf32>, vector<16x128xf32> -> vector<16x128xf32>
    %c0_28 = arith.constant 0 : index
    %c1 = arith.constant 1 : index
    %c0_29 = arith.constant 0 : index
    %c0_30 = arith.constant 0 : index
    %44 = vector.load %arg19[%c0_28, %c1, %c0_29, %c0_30] : memref<1x8x1x128xf32, #tpu.memory_space<vmem>>, vector<1x1x1x128xf32>
    %45 = vector.shape_cast %44 : vector<1x1x1x128xf32> to vector<1x128xf32>
    %46 = vector.broadcast %45 : vector<1x128xf32> to vector<16x128xf32>
    %47 = arith.addf %43, %46 : vector<16x128xf32>
    %c0_31 = arith.constant 0 : index
    %c2_32 = arith.constant 2 : index
    %c0_33 = arith.constant 0 : index
    %c0_34 = arith.constant 0 : index
    %48 = vector.load %arg19[%c0_31, %c2_32, %c0_33, %c0_34] : memref<1x8x1x128xf32, #tpu.memory_space<vmem>>, vector<1x1x1x128xf32>
    %49 = vector.shape_cast %48 : vector<1x1x1x128xf32> to vector<1x128xf32>
    %c0_35 = arith.constant 0 : index
    %c3_36 = arith.constant 3 : index
    %c0_37 = arith.constant 0 : index
    %c0_38 = arith.constant 0 : index
    %50 = vector.load %arg19[%c0_35, %c3_36, %c0_37, %c0_38] : memref<1x8x1x128xf32, #tpu.memory_space<vmem>>, vector<1x1x1x128xf32>
    %51 = vector.shape_cast %50 : vector<1x1x1x128xf32> to vector<1x128xf32>
    %cst_39 = arith.constant dense<0.000000e+00> : vector<16xf32>
    %52 = vector.multi_reduction <add>, %47, %cst_39 [1] : vector<16x128xf32> to vector<16xf32>
    %53 = vector.shape_cast %52 : vector<16xf32> to vector<16x1xf32>
    %cst_40 = arith.constant 3.125000e-02 : f32
    %54 = vector.broadcast %cst_40 : f32 to vector<16x1xf32>
    %55 = arith.mulf %53, %54 : vector<16x1xf32>
    %56 = tpu.iota {dimensions = array<i32: 1>} : vector<16x128xi32>
    %c32_i32 = arith.constant 32 : i32
    %57 = vector.broadcast %c32_i32 : i32 to vector<16x128xi32>
    %58 = arith.cmpi slt, %56, %57 : vector<16x128xi32>
    %59 = vector.broadcast %55 : vector<16x1xf32> to vector<16x128xf32>
    %60 = arith.subf %47, %59 : vector<16x128xf32>
    %cst_41 = arith.constant 0.000000e+00 : f32
    %61 = vector.broadcast %cst_41 : f32 to vector<16x128xf32>
    %62 = arith.select %58, %60, %61 : vector<16x128xi1>, vector<16x128xf32>
    %63 = arith.mulf %62, %62 : vector<16x128xf32>
    %cst_42 = arith.constant dense<0.000000e+00> : vector<16xf32>
    %64 = vector.multi_reduction <add>, %63, %cst_42 [1] : vector<16x128xf32> to vector<16xf32>
    %65 = vector.shape_cast %64 : vector<16xf32> to vector<16x1xf32>
    %cst_43 = arith.constant 3.125000e-02 : f32
    %66 = vector.broadcast %cst_43 : f32 to vector<16x1xf32>
    %67 = arith.mulf %65, %66 : vector<16x1xf32>
    %68 = vector.broadcast %55 : vector<16x1xf32> to vector<16x128xf32>
    %69 = arith.subf %47, %68 : vector<16x128xf32>
    %cst_44 = arith.constant 9.99999974E-6 : f32
    %70 = vector.broadcast %cst_44 : f32 to vector<16x1xf32>
    %71 = arith.addf %67, %70 : vector<16x1xf32>
    %72 = math.rsqrt %71 : vector<16x1xf32>
    %73 = vector.broadcast %72 : vector<16x1xf32> to vector<16x128xf32>
    %74 = arith.mulf %69, %73 : vector<16x128xf32>
    %75 = vector.broadcast %49 : vector<1x128xf32> to vector<16x128xf32>
    %76 = arith.mulf %74, %75 : vector<16x128xf32>
    %77 = vector.broadcast %51 : vector<1x128xf32> to vector<16x128xf32>
    %78 = arith.addf %76, %77 : vector<16x128xf32>
    %79 = arith.addf %14, %78 : vector<16x128xf32>
    %80 = arith.index_cast %6 : i32 to index
    %c0_45 = arith.constant 0 : index
    %81 = vector.load %arg26[%80, %c0_45] : memref<32x128xf32, #tpu.memory_space<vmem>>, vector<16x128xf32>
    tpu.vector_store %arg26[%80, %c0_45], %79 {strides = array<i32>} : memref<32x128xf32, #tpu.memory_space<vmem>>, vector<16x128xf32>,
    %c0_46 = arith.constant 0 : index
    %c0_47 = arith.constant 0 : index
    %82 = vector.load %arg27[%c0_46, %c0_47] : memref<16x128xf32, #tpu.memory_space<vmem>>, vector<16x128xf32>
    %cst_48 = arith.constant dense<0.000000e+00> : vector<16x128xf32>
    %83 = tpu.matmul %25, %79, %cst_48 {dimension_numbers = #tpu.dot_dimension_numbers<[0], [0], [1], [1], [0, 1, 1, 1], [], []>} : vector<16x16xf32>, vector<16x128xf32>, vector<16x128xf32> -> vector<16x128xf32>
    %84 = arith.addf %82, %83 : vector<16x128xf32>
    %c0_49 = arith.constant 0 : index
    %c0_50 = arith.constant 0 : index
    %85 = vector.load %arg27[%c0_49, %c0_50] : memref<16x128xf32, #tpu.memory_space<vmem>>, vector<16x128xf32>
    tpu.vector_store %arg27[%c0_49, %c0_50], %84 {strides = array<i32>} : memref<16x128xf32, #tpu.memory_space<vmem>>, vector<16x128xf32>,
    %c1_i32 = arith.constant 1 : i32
    %86 = arith.cmpi eq, %arg1, %c1_i32 : i32
    %87 = arith.extui %86 : i1 to i32
    %c0_i32_51 = arith.constant 0 : i32
    %88 = arith.cmpi ne, %87, %c0_i32_51 : i32
    scf.if %88 {
      %c0_55 = arith.constant 0 : index
      %c0_56 = arith.constant 0 : index
      %94 = vector.load %arg25[%c0_55, %c0_56] : memref<16x128xf32, #tpu.memory_space<vmem>>, vector<16x128xf32>
      %c0_57 = arith.constant 0 : index
      %c4 = arith.constant 4 : index
      %c0_58 = arith.constant 0 : index
      %c0_59 = arith.constant 0 : index
      %95 = vector.load %arg18[%c0_57, %c4, %c0_58, %c0_59] : memref<1x7x128x128xf32, #tpu.memory_space<vmem>>, vector<1x1x128x128xf32>
      %96 = vector.shape_cast %95 : vector<1x1x128x128xf32> to vector<128x128xf32>
      %cst_60 = arith.constant dense<0.000000e+00> : vector<16x128xf32>
      %97 = tpu.matmul %94, %96, %cst_60 {dimension_numbers = #tpu.dot_dimension_numbers<[1], [0], [0], [1], [0, 0, 1, 1], [], []>} : vector<16x128xf32>, vector<128x128xf32>, vector<16x128xf32> -> vector<16x128xf32>
      %c0_61 = arith.constant 0 : index
      %c0_62 = arith.constant 0 : index
      %98 = vector.load %arg27[%c0_61, %c0_62] : memref<16x128xf32, #tpu.memory_space<vmem>>, vector<16x128xf32>
      %c0_63 = arith.constant 0 : index
      %c5 = arith.constant 5 : index
      %c0_64 = arith.constant 0 : index
      %c0_65 = arith.constant 0 : index
      %99 = vector.load %arg18[%c0_63, %c5, %c0_64, %c0_65] : memref<1x7x128x128xf32, #tpu.memory_space<vmem>>, vector<1x1x128x128xf32>
      %100 = vector.shape_cast %99 : vector<1x1x128x128xf32> to vector<128x128xf32>
      %cst_66 = arith.constant dense<0.000000e+00> : vector<16x128xf32>
      %101 = tpu.matmul %98, %100, %cst_66 {dimension_numbers = #tpu.dot_dimension_numbers<[1], [0], [0], [1], [0, 0, 1, 1], [], []>} : vector<16x128xf32>, vector<128x128xf32>, vector<16x128xf32> -> vector<16x128xf32>
      %102 = arith.addf %97, %101 : vector<16x128xf32>
      %c0_67 = arith.constant 0 : index
      %c4_68 = arith.constant 4 : index
      %c0_69 = arith.constant 0 : index
      %c0_70 = arith.constant 0 : index
      %103 = vector.load %arg19[%c0_67, %c4_68, %c0_69, %c0_70] : memref<1x8x1x128xf32, #tpu.memory_space<vmem>>, vector<1x1x1x128xf32>
      %104 = vector.shape_cast %103 : vector<1x1x1x128xf32> to vector<1x128xf32>
      %105 = vector.broadcast %104 : vector<1x128xf32> to vector<16x128xf32>
      %106 = arith.addf %102, %105 : vector<16x128xf32>
      %cst_71 = arith.constant 0.000000e+00 : f32
      %107 = vector.broadcast %cst_71 : f32 to vector<16x128xf32>
      %108 = arith.maximumf %106, %107 : vector<16x128xf32>
      %c0_72 = arith.constant 0 : index
      %c6 = arith.constant 6 : index
      %c0_73 = arith.constant 0 : index
      %c0_74 = arith.constant 0 : index
      %109 = vector.load %arg18[%c0_72, %c6, %c0_73, %c0_74] : memref<1x7x128x128xf32, #tpu.memory_space<vmem>>, vector<1x1x128x128xf32>
      %110 = vector.shape_cast %109 : vector<1x1x128x128xf32> to vector<128x128xf32>
      %cst_75 = arith.constant dense<0.000000e+00> : vector<16x128xf32>
      %111 = tpu.matmul %108, %110, %cst_75 {dimension_numbers = #tpu.dot_dimension_numbers<[1], [0], [0], [1], [0, 0, 1, 1], [], []>} : vector<16x128xf32>, vector<128x128xf32>, vector<16x128xf32> -> vector<16x128xf32>
      %c0_76 = arith.constant 0 : index
      %c5_77 = arith.constant 5 : index
      %c0_78 = arith.constant 0 : index
      %c0_79 = arith.constant 0 : index
      %112 = vector.load %arg19[%c0_76, %c5_77, %c0_78, %c0_79] : memref<1x8x1x128xf32, #tpu.memory_space<vmem>>, vector<1x1x1x128xf32>
      %113 = vector.shape_cast %112 : vector<1x1x1x128xf32> to vector<1x128xf32>
      %114 = vector.broadcast %113 : vector<1x128xf32> to vector<16x128xf32>
      %115 = arith.addf %111, %114 : vector<16x128xf32>
      %c0_80 = arith.constant 0 : index
      %c6_81 = arith.constant 6 : index
      %c0_82 = arith.constant 0 : index
      %c0_83 = arith.constant 0 : index
      %116 = vector.load %arg19[%c0_80, %c6_81, %c0_82, %c0_83] : memref<1x8x1x128xf32, #tpu.memory_space<vmem>>, vector<1x1x1x128xf32>
      %117 = vector.shape_cast %116 : vector<1x1x1x128xf32> to vector<1x128xf32>
      %c0_84 = arith.constant 0 : index
      %c7 = arith.constant 7 : index
      %c0_85 = arith.constant 0 : index
      %c0_86 = arith.constant 0 : index
      %118 = vector.load %arg19[%c0_84, %c7, %c0_85, %c0_86] : memref<1x8x1x128xf32, #tpu.memory_space<vmem>>, vector<1x1x1x128xf32>
      %119 = vector.shape_cast %118 : vector<1x1x1x128xf32> to vector<1x128xf32>
      %cst_87 = arith.constant dense<0.000000e+00> : vector<16xf32>
      %120 = vector.multi_reduction <add>, %115, %cst_87 [1] : vector<16x128xf32> to vector<16xf32>
      %121 = vector.shape_cast %120 : vector<16xf32> to vector<16x1xf32>
      %cst_88 = arith.constant 3.125000e-02 : f32
      %122 = vector.broadcast %cst_88 : f32 to vector<16x1xf32>
      %123 = arith.mulf %121, %122 : vector<16x1xf32>
      %124 = tpu.iota {dimensions = array<i32: 1>} : vector<16x128xi32>
      %c32_i32_89 = arith.constant 32 : i32
      %125 = vector.broadcast %c32_i32_89 : i32 to vector<16x128xi32>
      %126 = arith.cmpi slt, %124, %125 : vector<16x128xi32>
      %127 = vector.broadcast %123 : vector<16x1xf32> to vector<16x128xf32>
      %128 = arith.subf %115, %127 : vector<16x128xf32>
      %cst_90 = arith.constant 0.000000e+00 : f32
      %129 = vector.broadcast %cst_90 : f32 to vector<16x128xf32>
      %130 = arith.select %126, %128, %129 : vector<16x128xi1>, vector<16x128xf32>
      %131 = arith.mulf %130, %130 : vector<16x128xf32>
      %cst_91 = arith.constant dense<0.000000e+00> : vector<16xf32>
      %132 = vector.multi_reduction <add>, %131, %cst_91 [1] : vector<16x128xf32> to vector<16xf32>
      %133 = vector.shape_cast %132 : vector<16xf32> to vector<16x1xf32>
      %cst_92 = arith.constant 3.125000e-02 : f32
      %134 = vector.broadcast %cst_92 : f32 to vector<16x1xf32>
      %135 = arith.mulf %133, %134 : vector<16x1xf32>
      %136 = vector.broadcast %123 : vector<16x1xf32> to vector<16x128xf32>
      %137 = arith.subf %115, %136 : vector<16x128xf32>
      %cst_93 = arith.constant 9.99999974E-6 : f32
      %138 = vector.broadcast %cst_93 : f32 to vector<16x1xf32>
      %139 = arith.addf %135, %138 : vector<16x1xf32>
      %140 = math.rsqrt %139 : vector<16x1xf32>
      %141 = vector.broadcast %140 : vector<16x1xf32> to vector<16x128xf32>
      %142 = arith.mulf %137, %141 : vector<16x128xf32>
      %143 = vector.broadcast %117 : vector<1x128xf32> to vector<16x128xf32>
      %144 = arith.mulf %142, %143 : vector<16x128xf32>
      %145 = vector.broadcast %119 : vector<1x128xf32> to vector<16x128xf32>
      %146 = arith.addf %144, %145 : vector<16x128xf32>
      %147 = arith.addf %94, %146 : vector<16x128xf32>
      %c0_94 = arith.constant 0 : index
      %c0_95 = arith.constant 0 : index
      %148 = vector.load %arg25[%c0_94, %c0_95] : memref<16x128xf32, #tpu.memory_space<vmem>>, vector<16x128xf32>
      tpu.vector_store %arg25[%c0_94, %c0_95], %147 {strides = array<i32>} : memref<16x128xf32, #tpu.memory_space<vmem>>, vector<16x128xf32>,
    } else {
    }
    %c1_i32_52 = arith.constant 1 : i32
    %89 = arith.cmpi eq, %arg0, %c1_i32_52 : i32
    %c1_i32_53 = arith.constant 1 : i32
    %90 = arith.cmpi eq, %arg1, %c1_i32_53 : i32
    %91 = arith.andi %89, %90 : i1
    %92 = arith.extui %91 : i1 to i32
    %c0_i32_54 = arith.constant 0 : i32
    %93 = arith.cmpi ne, %92, %c0_i32_54 : i32
    scf.if %93 {
      %c0_55 = arith.constant 0 : index
      %c0_56 = arith.constant 0 : index
      %94 = vector.load %arg25[%c0_55, %c0_56] : memref<16x128xf32, #tpu.memory_space<vmem>>, vector<16x128xf32>
      %c0_57 = arith.constant 0 : index
      %c0_58 = arith.constant 0 : index
      %95 = vector.load %arg20[%c0_57, %c0_58] : memref<128x128xf32, #tpu.memory_space<vmem>>, vector<128x128xf32>
      %cst_59 = arith.constant dense<0.000000e+00> : vector<16x128xf32>
      %96 = tpu.matmul %94, %95, %cst_59 {dimension_numbers = #tpu.dot_dimension_numbers<[1], [0], [0], [1], [0, 0, 1, 1], [], []>} : vector<16x128xf32>, vector<128x128xf32>, vector<16x128xf32> -> vector<16x128xf32>
      %c0_60 = arith.constant 0 : index
      %c0_61 = arith.constant 0 : index
      %97 = vector.load %arg21[%c0_60, %c0_61] : memref<1x128xf32, #tpu.memory_space<vmem>>, vector<1x128xf32>
      %98 = vector.broadcast %97 : vector<1x128xf32> to vector<16x128xf32>
      %99 = arith.addf %96, %98 : vector<16x128xf32>
      %cst_62 = arith.constant 0.000000e+00 : f32
      %100 = vector.broadcast %cst_62 : f32 to vector<16x128xf32>
      %101 = arith.maximumf %99, %100 : vector<16x128xf32>
      %c0_63 = arith.constant 0 : index
      %c0_64 = arith.constant 0 : index
      %102 = vector.load %arg22[%c0_63, %c0_64] : memref<128x128xf32, #tpu.memory_space<vmem>>, vector<128x128xf32>
      %cst_65 = arith.constant dense<0.000000e+00> : vector<16x128xf32>
      %103 = tpu.matmul %101, %102, %cst_65 {dimension_numbers = #tpu.dot_dimension_numbers<[1], [0], [0], [1], [0, 0, 1, 1], [], []>} : vector<16x128xf32>, vector<128x128xf32>, vector<16x128xf32> -> vector<16x128xf32>
      %c0_66 = arith.constant 0 : index
      %c0_67 = arith.constant 0 : index
      %104 = vector.load %arg23[%c0_66, %c0_67] : memref<1x128xf32, #tpu.memory_space<vmem>>, vector<1x128xf32>
      %105 = vector.broadcast %104 : vector<1x128xf32> to vector<16x128xf32>
      %106 = arith.addf %103, %105 : vector<16x128xf32>
      %c0_68 = arith.constant 0 : index
      %c0_69 = arith.constant 0 : index
      %107 = vector.load %arg24[%c0_68, %c0_69] : memref<16x128xf32, #tpu.memory_space<vmem>>, vector<16x128xf32>
      tpu.vector_store %arg24[%c0_68, %c0_69], %106 {strides = array<i32>} : memref<16x128xf32, #tpu.memory_space<vmem>>, vector<16x128xf32>,
    } else {
    }
    return
  }
  func.func @transform_0(%arg0: i32, %arg1: i32) -> (i32, i32) {
    %c0_i32 = arith.constant 0 : i32
    %c0_i32_0 = arith.constant 0 : i32
    %c0_i32_1 = arith.constant 0 : i32
    return %c0_i32, %c0_i32_0 : i32, i32
  }
  func.func @transform_1(%arg0: i32, %arg1: i32) -> (i32, i32) {
    %c0_i32 = arith.constant 0 : i32
    %0 = arith.cmpi eq, %arg0, %c0_i32 : i32
    %c0_i32_0 = arith.constant 0 : i32
    %1 = arith.select %0, %arg1, %c0_i32_0 : i32
    %c0_i32_1 = arith.constant 0 : i32
    %c0_i32_2 = arith.constant 0 : i32
    return %1, %c0_i32_1 : i32, i32
  }
  func.func @transform_2(%arg0: i32, %arg1: i32) -> (i32, i32) {
    %c0_i32 = arith.constant 0 : i32
    %c0_i32_0 = arith.constant 0 : i32
    return %arg1, %c0_i32 : i32, i32
  }
  func.func @transform_3(%arg0: i32, %arg1: i32) -> (i32, i32) {
    %c0_i32 = arith.constant 0 : i32
    %c0_i32_0 = arith.constant 0 : i32
    return %arg1, %c0_i32 : i32, i32
  }
  func.func @transform_4(%arg0: i32, %arg1: i32) -> (i32, i32) {
    %c0_i32 = arith.constant 0 : i32
    %c0_i32_0 = arith.constant 0 : i32
    %c0_i32_1 = arith.constant 0 : i32
    return %c0_i32, %c0_i32_0 : i32, i32
  }
  func.func @transform_5(%arg0: i32, %arg1: i32) -> (i32, i32) {
    %c0_i32 = arith.constant 0 : i32
    %c0_i32_0 = arith.constant 0 : i32
    %c0_i32_1 = arith.constant 0 : i32
    return %c0_i32, %c0_i32_0 : i32, i32
  }
  func.func @transform_6(%arg0: i32, %arg1: i32) -> (i32, i32) {
    %c0_i32 = arith.constant 0 : i32
    %c0_i32_0 = arith.constant 0 : i32
    %c0_i32_1 = arith.constant 0 : i32
    return %c0_i32, %c0_i32_0 : i32, i32
  }
  func.func @transform_7(%arg0: i32, %arg1: i32) -> (i32, i32) {
    %c0_i32 = arith.constant 0 : i32
    %c0_i32_0 = arith.constant 0 : i32
    %c0_i32_1 = arith.constant 0 : i32
    return %c0_i32, %c0_i32_0 : i32, i32
  }
  func.func @transform_8(%arg0: i32, %arg1: i32) -> (i32, i32) {
    %c0_i32 = arith.constant 0 : i32
    %c0_i32_0 = arith.constant 0 : i32
    %c0_i32_1 = arith.constant 0 : i32
    return %c0_i32, %c0_i32_0 : i32, i32
  }
  func.func @transform_9(%arg0: i32, %arg1: i32) -> (i32, i32) {
    %c0_i32 = arith.constant 0 : i32
    %c0_i32_0 = arith.constant 0 : i32
    %c0_i32_1 = arith.constant 0 : i32
    return %c0_i32, %c0_i32_0 : i32, i32
  }
  func.func @transform_10(%arg0: i32, %arg1: i32) -> (i32, i32) {
    %c0_i32 = arith.constant 0 : i32
    %c0_i32_0 = arith.constant 0 : i32
    %c0_i32_1 = arith.constant 0 : i32
    return %c0_i32, %c0_i32_0 : i32, i32
  }
  func.func @transform_11(%arg0: i32, %arg1: i32) -> (i32, i32) {
    %c0_i32 = arith.constant 0 : i32
    %c0_i32_0 = arith.constant 0 : i32
    %c0_i32_1 = arith.constant 0 : i32
    return %c0_i32, %c0_i32_0 : i32, i32
  }
  func.func @transform_12(%arg0: i32, %arg1: i32) -> (i32, i32) {
    %c0_i32 = arith.constant 0 : i32
    %c0_i32_0 = arith.constant 0 : i32
    %c0_i32_1 = arith.constant 0 : i32
    return %c0_i32, %c0_i32_0 : i32, i32
  }
  func.func @transform_13(%arg0: i32, %arg1: i32) -> (i32, i32) {
    %c0_i32 = arith.constant 0 : i32
    %c0_i32_0 = arith.constant 0 : i32
    %c0_i32_1 = arith.constant 0 : i32
    return %c0_i32, %c0_i32_0 : i32, i32
  }
  func.func @transform_14(%arg0: i32, %arg1: i32) -> (i32, i32) {
    %c0_i32 = arith.constant 0 : i32
    %c0_i32_0 = arith.constant 0 : i32
    %c0_i32_1 = arith.constant 0 : i32
    return %c0_i32, %c0_i32_0 : i32, i32
  }
  func.func @transform_15(%arg0: i32, %arg1: i32) -> (i32, i32) {
    %c0_i32 = arith.constant 0 : i32
    %c0_i32_0 = arith.constant 0 : i32
    %c0_i32_1 = arith.constant 0 : i32
    return %c0_i32, %c0_i32_0 : i32, i32
  }
  func.func @transform_16(%arg0: i32, %arg1: i32) -> (i32, i32, i32, i32) {
    %c0_i32 = arith.constant 0 : i32
    %c0_i32_0 = arith.constant 0 : i32
    %c0_i32_1 = arith.constant 0 : i32
    %c0_i32_2 = arith.constant 0 : i32
    return %arg0, %c0_i32, %c0_i32_0, %c0_i32_1 : i32, i32, i32, i32
  }
  func.func @transform_17(%arg0: i32, %arg1: i32) -> (i32, i32, i32, i32) {
    %c0_i32 = arith.constant 0 : i32
    %c0_i32_0 = arith.constant 0 : i32
    %c0_i32_1 = arith.constant 0 : i32
    %c0_i32_2 = arith.constant 0 : i32
    return %arg0, %c0_i32, %c0_i32_0, %c0_i32_1 : i32, i32, i32, i32
  }
  func.func @transform_18(%arg0: i32, %arg1: i32) -> (i32, i32) {
    %c0_i32 = arith.constant 0 : i32
    %c0_i32_0 = arith.constant 0 : i32
    %c0_i32_1 = arith.constant 0 : i32
    return %c0_i32, %c0_i32_0 : i32, i32
  }
  func.func @transform_19(%arg0: i32, %arg1: i32) -> (i32, i32) {
    %c0_i32 = arith.constant 0 : i32
    %c0_i32_0 = arith.constant 0 : i32
    %c0_i32_1 = arith.constant 0 : i32
    return %c0_i32, %c0_i32_0 : i32, i32
  }
  func.func @transform_20(%arg0: i32, %arg1: i32) -> (i32, i32) {
    %c0_i32 = arith.constant 0 : i32
    %c0_i32_0 = arith.constant 0 : i32
    %c0_i32_1 = arith.constant 0 : i32
    return %c0_i32, %c0_i32_0 : i32, i32
  }
  func.func @transform_21(%arg0: i32, %arg1: i32) -> (i32, i32) {
    %c0_i32 = arith.constant 0 : i32
    %c0_i32_0 = arith.constant 0 : i32
    %c0_i32_1 = arith.constant 0 : i32
    return %c0_i32, %c0_i32_0 : i32, i32
  }
  func.func @transform_22(%arg0: i32, %arg1: i32) -> (i32, i32) {
    %c0_i32 = arith.constant 0 : i32
    %c0_i32_0 = arith.constant 0 : i32
    %c0_i32_1 = arith.constant 0 : i32
    return %c0_i32, %c0_i32_0 : i32, i32
  }
}

</mosaic_0001>

<bundles_post_ra>
// kernel: tpu_custom_call.1
= control target key start
LH: loop header
LB: loop body
LE: loop exit
PB: predicated region body
PF: predicated region fallthrough
CT: control target
= control target key end

     0   :  { %s3294_s0 = inlined_call_operand.vmem [shape: f32[16,8], index: 0, kind: input, shape index: {}]   ;;  %s3295_s1 = inlined_call_operand.vmem [shape: f32[32,8], index: 1, kind: input, shape index: {}]   ;;  %s3296_s2 = inlined_call_operand.vmem [shape: s32[32,1], index: 2, kind: input, shape index: {}]   ;;  %s3297_s3 = inlined_call_operand.vmem [shape: s32[32,1], index: 3, kind: input, shape index: {}]   ;;  %s3298_s4 = inlined_call_operand.vmem [shape: f32[8,128], index: 4, kind: input, shape index: {}]   ;;  %s3299_s5 = inlined_call_operand.vmem [shape: f32[1,128], index: 5, kind: input, shape index: {}]   ;;  %s3300_s6 = inlined_call_operand.hbm [shape: f32[128,128], index: 6, kind: input, shape index: {}]   ;;  %s3301_s7 = inlined_call_operand.vmem [shape: f32[1,128], index: 7, kind: input, shape index: {}]   ;;  %s3302_s8 = inlined_call_operand.vmem [shape: f32[1,128], index: 8, kind: input, shape index: {}]   ;;  %s3303_s9 = inlined_call_operand.vmem [shape: f32[1,128], index: 9, kind: input, shape index: {}]   ;;  %s3304_s10 = inlined_call_operand.vmem [shape: f32[8,128], index: 10, kind: input, shape index: {}]   ;;  %s3305_s11 = inlined_call_operand.vmem [shape: f32[1,128], index: 11, kind: input, shape index: {}]   ;;  %s3306_s12 = inlined_call_operand.hbm [shape: f32[128,128], index: 12, kind: input, shape index: {}]   ;;  %s3307_s13 = inlined_call_operand.vmem [shape: f32[1,128], index: 13, kind: input, shape index: {}]   ;;  %s3308_s14 = inlined_call_operand.vmem [shape: f32[1,128], index: 14, kind: input, shape index: {}]   ;;  %s3309_s15 = inlined_call_operand.vmem [shape: f32[1,128], index: 15, kind: input, shape index: {}]   ;;  %s3310_s16 = inlined_call_operand.hbm [shape: f32[2,7,128,128], index: 16, kind: input, shape index: {}]   ;;  %s3311_s17 = inlined_call_operand.vmem [shape: f32[2,8,1,128], index: 17, kind: input, shape index: {}]   ;;  %s3312_s18 = inlined_call_operand.hbm [shape: f32[128,128], index: 18, kind: input, shape index: {}]   ;;  %s3313_s19 = inlined_call_operand.vmem [shape: f32[1,128], index: 19, kind: input, shape index: {}]   ;;  %s3314_s20 = inlined_call_operand.hbm [shape: f32[128,128], index: 20, kind: input, shape index: {}]   ;;  %s3315_s21 = inlined_call_operand.vmem [shape: f32[1,128], index: 21, kind: input, shape index: {}]   ;;  %s3316_s22 = inlined_call_operand.hbm [shape: f32[16,128], index: 22, kind: output, shape index: {}]  }
   0x1   :  { %3323 = sst [smem:[#allocation27_spill]] %s3294_s0 }
   0x2   :  { %3324 = sst [smem:[#allocation28_spill]] %s3295_s1 }
   0x3   :  { %3325 = sst [smem:[#allocation29_spill]] %s3296_s2 }
   0x4   :  { %3326 = sst [smem:[#allocation30_spill]] %s3297_s3 }
   0x5   :  { %3327 = sst [smem:[#allocation31_spill]] %s3298_s4 }
   0x6   :  { %3328 = sst [smem:[#allocation32_spill]] %s3299_s5 }
   0x7   :  { %3329 = sst [smem:[#allocation33_spill]] %s3300_s6 }
   0x8   :  { %3330 = sst [smem:[#allocation34_spill]] %s3305_s11 }
   0x9   :  { %3331 = sst [smem:[#allocation35_spill]] %s3306_s12 }
   0xa   :  { %3332 = sst [smem:[#allocation36_spill]] %s3307_s13 }
   0xb   :  { %3333 = sst [smem:[#allocation37_spill]] %s3308_s14 }
   0xc   :  { %3334 = sst [smem:[#allocation38_spill]] %s3309_s15 }
   0xd   :  { %3335 = sst [smem:[#allocation39_spill]] %s3310_s16 }
   0xe   :  { %3336 = sst [smem:[#allocation40_spill]] %s3312_s18 }
   0xf   :  { %3337 = sst [smem:[#allocation41_spill]] %s3313_s19 }
  0x10   :  { %3338 = sst [smem:[#allocation42_spill]] %s3314_s20 }
  0x11   :  { %3339 = sst [smem:[#allocation43_spill]] %s3315_s21 }
  0x12   :  { %3340 = sst [smem:[#allocation44_spill]] %s3316_s22 }
  0x13   :  { %27 = vsyncpa [#allocation8], 0 }
  0x14   :  { %28 = vsyncpa [#allocation11], 0 }
  0x15   :  { %29 = vsyncpa [#allocation15], 0 }
  0x16   :  { %30 = vsyncpa [#allocation9], 0  ;;  %s2862_s3 = smov 0   ;;  %s2864_s28 = smov 0  }
  0x17   :  { %s2866_s29 = smov 0   ;;  %s2868_s30 = smov 0  }
  0x18   :  { %s2870_s4 = smov 0   ;;  %s2872_s0 = smov 0  }
  0x19   :  { %s2874_s23 = smov 0   ;;  %s2876_s1 = smov 0  }
  0x1a LB: > { %3341 = sst [smem:[#allocation23_spill]] %s2725_s0  ;;  %s2901_s5 = sadd.s32 4294967295, %s2733_s1   ;;  %s2733_s1 = sphi %s2876_s1, %s36_s1   ;;  %s2729_s23 = sphi %s2874_s23, %s3376_s23   ;;  %s2725_s0 = sphi %s2872_s0, %s3370_s0   ;;  %s2721_s4 = sphi %s2870_s4, %s3375_s4   ;;  %s2717_s30 = sphi %s2868_s30, %s3369_s30   ;;  %s2713_s29 = sphi %s2866_s29, %s3374_s29   ;;  %s2709_s28 = sphi %s2864_s28, %s3373_s28   ;;  %s2705_s3 = sphi %s2862_s3, %s3372_s3  }
  0x1b   : > { %3342 = sst [smem:[#allocation24_spill]] %s2733_s1  ;;  %p423_p0 = scmp.ne.s32.totalorder %s2709_s28, %s2705_s3 }
  0x1c   : > { %p424_p1 = scmp.eq.s32.totalorder %s2901_s5, 0  ;;  %p2032_p2 = scmp.ge.s32.totalorder %s2733_s1, 1 }
  0x1d   : > { %p565_p3 = scmp.lt.s32.totalorder %s2733_s1, 5  ;;  %s3344_s26 = sld [smem:[#allocation33_spill]] }
  0x1e   : > { %p2909_p4 = por %p424_p1, %p423_p0  ;;  %s2735_s3 = smov [#allocation7]  }
  0x1f   : > { %p2916_p5 = pnand %p2032_p2, %p565_p3  ;;  %s587_s22 = sshll.u32 %s2735_s3, 4  ;;  %s588_s22 = int_to_ptr.vmem [resolvable:$true] %s587_s22 }
  0x20   : > { %s3347_s12 = sld [smem:[#allocation35_spill]]  ;;  %s3318_s25 = smov 128  }
  0x21   : > { %p2329_p6 = pneg %p2916_p5  ;;  %s2738_s3 = smov [#allocation10]  }
  0x22   : > { %s616_s14 = sshll.u32 %s2738_s3, 4  ;;  %s3348_s18 = sld [smem:[#allocation40_spill]]  ;;  %s617_s14 = int_to_ptr.vmem [resolvable:$true] %s616_s14 }
  0x23   : > { %s585_s2 = sshll.u32 %s3344_s26, 4  ;;  %p2924_p7 = pnand %p2329_p6, %p424_p1  ;;  %s586_s2 = int_to_ptr.hbm [resolvable:$true] %s585_s2 }
  0x24   : > { %s3319_s26 = smov 8   ;;  %s3349_s20 = sld [smem:[#allocation42_spill]] }
  0x25   : > { %2332 = dma.hbm_to_vmem [thread:$0]  (!%p2924_p7), %s586_s2, 2048, %s588_s22, [#allocation8], %s3318_s25, %s3318_s25, %s3319_s26  }
  0x26   : > { %s614_s6 = sshll.u32 %s3347_s12, 4  ;;  %s2739_s3 = smov [#allocation13]   ;;  %s615_s6 = int_to_ptr.hbm [resolvable:$true] %s614_s6 }
  0x27   : > { %2335 = dma.hbm_to_vmem [thread:$0]  (!%p2924_p7), %s615_s6, 2048, %s617_s14, [#allocation11], %s3318_s25, %s3318_s25, %s3319_s26  }
  0x28   : > { %s637_s15 = sshll.u32 %s3348_s18, 4  ;;  %s639_s11 = sshll.u32 %s2739_s3, 4  ;;  %s638_s15 = int_to_ptr.hbm [resolvable:$true] %s637_s15  ;;  %s640_s11 = int_to_ptr.vmem [resolvable:$true] %s639_s11 }
  0x29   : > { %2338 = dma.hbm_to_vmem [thread:$0]  (!%p2924_p7), %s638_s15, 2048, %s640_s11, [#allocation11], %s3318_s25, %s3318_s25, %s3319_s26  }
  0x2a   : > { %s654_s2 = sshll.u32 %s3349_s20, 4  ;;  %s2740_s13 = smov [#allocation14]   ;;  %s655_s2 = int_to_ptr.hbm [resolvable:$true] %s654_s2 }
  0x2b   : > { %s656_s14 = sshll.u32 %s2740_s13, 4  ;;  %s45_s6 = sadd.s32 1, %s2725_s0  ;;  %s657_s14 = int_to_ptr.vmem [resolvable:$true] %s656_s14 }
  0x2c   : > { %2341 = dma.hbm_to_vmem [thread:$0]  (!%p2924_p7), %s655_s2, 2048, %s657_s14, [#allocation15], %s3318_s25, %s3318_s25, %s3319_s26  }
  0x2d   : > { %s48_s19 = sadd.s32 1, %s2729_s23  ;;  %p46_p8 = scmp.ge.s32.totalorder %s45_s6, 2 }
  0x2e   : > { %s410_s22 = sadd.s32 1, %s2713_s29  ;;  %p417_p9 = scmp.ne.s32.totalorder %s2713_s29, %s2709_s28 }
  0x2f   : > { %p418_p10 = scmp.eq.s32.totalorder %s2733_s1, 0  ;;  %s3378_s6 = smov (%p46_p8, %s45_s6), 0 }
  0x30   : > { %3350 = sst [smem:[#allocation25_spill]] %s3378_s6  ;;  %s3380_s19 = smov (!%p46_p8, %s48_s19), %s2729_s23 }
  0x31   : > { %p419_p11 = por %p418_p10, %p417_p9  ;;  %p2350_p12 = scmp.lt.s32.totalorder %s2733_s1, 4 }
  0x32   : > { %p50_p13 = scmp.ge.s32.totalorder %s3380_s19, 2  ;;  %s704_s21 = sand.u32 1, %s2733_s1  }
  0x33   : > { %s706_s15 = sand.u32 1, %s2713_s29   ;;  %p2343_p0 = pnand %p2350_p12, %p419_p11 }
  0x34   : > { %s3382_s19 = smov (%p50_p13, %s3380_s19), 0  ;;  %s2304_s2 = smul.u32 896, %s706_s15 }
  0x35   : > { %3351 = sst [smem:[#allocation26_spill]] %s3382_s19  ;;  %s407_s3 = ssub.s32 %s2729_s23, %s3382_s19 }
  0x36   : > { %s2305_s11 = smul.u32 896, %s2729_s23  ;;  %p408_p2 = scmp.eq.s32.totalorder %s407_s3, 0 }
  0x37   : > { %s3352_s16 = sld [smem:[#allocation39_spill]]  ;;  %s708_s26 = scalar_lea.vmem [#allocation12], %s2304_s2 }
  0x38   : > { %s716_s12 = sshll.u32 %s708_s26, 4  ;;  %s705_s6 = scalar_lea.sflag [#allocation8], %s704_s21  ;;  %s717_s12 = int_to_ptr.vmem [resolvable:$true] %s716_s12 }
  0x39   : > { %s2978_s18 = scalar_select %p408_p2, %s2713_s29, %s410_s22  }
  0x3a   : > { %s3353_s0 = smov 8   ;;  %s3354_s1 = smov 128  }
  0x3b   : > { %735 = sbr.rel (%p2916_p5) target bundleno = 3081 (0xc09), region = 108 }
  0x3d   : > { %s713_s25 = scalar_lea.hbm %s3352_s16, %s2305_s11 }
  0x3e   : > { %s714_s20 = sshll.u32 %s713_s25, 4  ;;  %s715_s20 = int_to_ptr.hbm [resolvable:$true] %s714_s20 }
  0x3f   : > { %2345 = dma.hbm_to_vmem [thread:$0]  (!%p2343_p0), %s715_s20, 14336, %s717_s12, %s705_s6, %s3354_s1, %s3354_s1, %s3353_s0  }
  0x40   : > { %2680 = dma.done.wait (%p424_p1), [#allocation8], 2048  }
  0x41   : > { %2682 = vsyncadd (%p424_p1), [#allocation8], 4294965248 }
  0x42   : > { %2684 = dma.done.wait (%p424_p1), [#allocation11], 2048  }
  0x43   : > { %2686 = vsyncadd (%p424_p1), [#allocation11], 4294965248  ;;  %s747_s25 = sand.u32 1, %s2901_s5   ;;  %s749_s12 = sand.u32 1, %s2709_s28  }
  0x44   : > { %s2306_s20 = smul.u32 896, %s749_s12  ;;  %s748_s0 = scalar_lea.sflag [#allocation8], %s747_s25 }
  0x46   : > { %s2995_s1 = scalar_lea.vmem [#allocation12], %s2306_s20 }
  0x47   : > { %2688 = dma.done.wait (%p2909_p4), %s748_s0, 14336  }
  0x48   : > { %2690 = vsyncadd (%p2909_p4), %s748_s0, 4294952960 }
  0x49   : > { %2692 = dma.done.wait (%p424_p1), [#allocation11], 2048  }
  0x4a   : > { %2694 = vsyncadd (%p424_p1), [#allocation11], 4294965248 }
  0x4b   : > { %2696 = dma.done.wait (%p424_p1), [#allocation15], 2048  }
  0x4c   : > { %2698 = vsyncadd (%p424_p1), [#allocation15], 4294965248  ;;  %p839_p3 = scmp.eq.s32.totalorder %s2721_s4, 0  ;;  %s2046_s24 = sshll.u32 %s2717_s30, 1 }
  0x4d   : > { %p850_p4 = scmp.lt.s32.totalorder %s2046_s24, 3  ;;  %p861_p5 = scmp.lt.s32.totalorder %s2721_s4, 1 }
  0x4e   : > { %s840_s27 = scalar_select %p839_p3, %s2717_s30, 0 }
  0x4f   : > { %s3384_s24 = smov (!%p850_p4, %s2046_s24), 3  ;;  %p866_p6 = scmp.eq.s32.totalorder %s2717_s30, 0 }
  0x50   : > { %s2044_s26 = sshll.u32 %s840_s27, 1  ;;  %s2047_s6 = sshll.u32 %s3384_s24, 3 }
  0x51   : > { %p842_p7 = scmp.lt.s32.totalorder %s2044_s26, 3  ;;  %s3355_s15 = sld [smem:[#allocation29_spill]] }
  0x52   : > { %s3356_s13 = sld [smem:[#allocation30_spill]]  ;;  %p867_p1 = pnand %p866_p6, %p839_p3 }
  0x53   : > { %s3386_s26 = smov (!%p842_p7, %s2044_s26), 3  ;;  %s3357_s27 = sld [smem:[#allocation28_spill]] }
  0x54   : > { %s862_s25 = scalar_select %p861_p5, %s2721_s4, 1 }
  0x55   : > { %s2045_s12 = sshll.u32 %s3386_s26, 3  ;;  %870 = sbr.rel (%p867_p1) target bundleno = 635 (0x27b), region = 132 }
  0x56   : > { %s2050_s24 = sshll.u32 %s862_s25, 3  ;;  %s3358_s3 = sld [smem:[#allocation31_spill]] (!%p867_p1) }
  0x57   : > { %s3019_s2 = scalar_lea.vmem %s3355_s15, %s2047_s6  ;;  %s3037_s21 = scalar_lea.vmem %s3311_s17, %s2050_s24 }
  0x58   : > { %s3024_s14 = scalar_lea.vmem %s3356_s13, %s2047_s6  ;;  %s3359_s13 = sld [smem:[#allocation27_spill]] (!%p867_p1) }
  0x59   : > { %s3032_s16 = scalar_lea.vmem %s3357_s27, %s2045_s12  ;;  %s3360_s0 = sld [smem:[#allocation32_spill]] (!%p867_p1) }
  0x5a   : > { %vm878_vm0 = vcmask 64512   ;;  %v925_v2 = vld [vmem:[#allocation7 + $0x78] sm:$0xff]  ;;  %v924_v3 = vld [vmem:[#allocation7 + $0x70] sm:$0xff]  ;;  %v923_v4 = vld [vmem:[#allocation7 + $0x68] sm:$0xff]  ;;  %v961_v31 = vlaneseq }
  0x5b   : > { %930 = vmatpush.msra.mxu1 %v925_v2  ;;  %2176 = vmatpush.msra.mxu2 %v925_v2  ;;  %v922_v5 = vld [vmem:[#allocation7 + $0x60] sm:$0xff]  ;;  %v921_v7 = vld [vmem:[#allocation7 + $0x58] sm:$0xff]  ;;  %v920_v8 = vld [vmem:[#allocation7 + $0x50] sm:$0xff] }
  0x5c   : > { %v873_v0 = vld [vmem:[%s3358_s3] sm:$0xff]  ;;  %v919_v9 = vld [vmem:[#allocation7 + $0x48] sm:$0xff]  ;;  %v917_v11 = vld [vmem:[#allocation7 + $0x38] sm:$0xff]  ;;  %v962_v32 = vand.u32 127, %v961_v31 }
  0x5d   : > { %900 = vmatpush.msra.mxu0 %v873_v0  ;;  %931 = vmatpush.msra.mxu1 %v924_v3  ;;  %v918_v10 = vld [vmem:[#allocation7 + $0x40] sm:$0xff]  ;;  %v916_v12 = vld [vmem:[#allocation7 + $0x30] sm:$0xff]  ;;  %v915_v13 = vld [vmem:[#allocation7 + $0x28] sm:$0xff] }
  0x5e   : > { %v871_v1 = vld [vmem:[%s3359_s13] sm:$0xff]  ;;  %2177 = vmatpush.msra.mxu2 %v924_v3  ;;  %v872_v6 = vld [vmem:[%s3359_s13 + $0x8] sm:$0xff]  ;;  %v913_v15 = vld [vmem:[#allocation7 + $0x18] sm:$0xff]  ;;  %vm963_vm1 = vcmp.lt.s32.totalorder %v962_v32, 32 }
  0x5f   : > { %2051 = vmatmul.msk.f32.vlgmr.msra.gmra.mxu0 %vm878_vm0, %v871_v1  ;;  %932 = vmatpush.msra.mxu1 %v923_v4  ;;  %v914_v14 = vld [vmem:[#allocation7 + $0x20] sm:$0xff]  ;;  %v912_v16 = vld [vmem:[#allocation7 + $0x10] sm:$0xff]  ;;  %v911_v17 = vld [vmem:[#allocation7 + $0x8] sm:$0xff] }
  0x60   : > { %2178 = vmatpush.msra.mxu2 %v923_v4  ;;  %v910_v18 = vld [vmem:[#allocation7] sm:$0xff] }
  0x61   : > { %933 = vmatpush.msra.mxu1 %v922_v5  ;;  %v2433_v19 = vld [vmem:[%s3360_s0] ss:$0 sm:$0xff] }
  0x62   : > { %2179 = vmatpush.msra.mxu2 %v922_v5  ;;  %v2434_v26 = vld [vmem:[%s3301_s7] ss:$0 sm:$0xff] }
  0x63   : > { %934 = vmatpush.msra.mxu1 %v921_v7  ;;  %v2435_v55 = vld [vmem:[%s3302_s8] ss:$0 sm:$0xff] }
  0x64   : > { %2180 = vmatpush.msra.mxu2 %v921_v7  ;;  %v2436_v57 = vld [vmem:[%s3303_s9] ss:$0 sm:$0xff] }
  0x65   : > { %935 = vmatpush.msra.mxu1 %v920_v8 }
  0x66   : > { %2181 = vmatpush.msra.mxu2 %v920_v8 }
  0x67   : > { %2052 = vmatmul.msk.f32.gmra.mxu0 %vm878_vm0, %v872_v6  ;;  %936 = vmatpush.msra.mxu1 %v919_v9 }
  0x68   : > { %2182 = vmatpush.msra.mxu2 %v919_v9 }
  0x69   : > { %937 = vmatpush.msra.mxu1 %v918_v10 }
  0x6a   : > { %2183 = vmatpush.msra.mxu2 %v918_v10 }
  0x6b   : > { %938 = vmatpush.msra.mxu1 %v917_v11 }
  0x6c   : > { %2184 = vmatpush.msra.mxu2 %v917_v11 }
  0x6d   : > { %939 = vmatpush.msra.mxu1 %v916_v12 }
  0x6e   : > { %2185 = vmatpush.msra.mxu2 %v916_v12 }
  0x6f   : > { %940 = vmatpush.msra.mxu1 %v915_v13 }
  0x70   : > { %2186 = vmatpush.msra.mxu2 %v915_v13 }
  0x71   : > { %941 = vmatpush.msra.mxu1 %v914_v14 }
  0x72   : > { %2187 = vmatpush.msra.mxu2 %v914_v14 }
  0x73   : > { %942 = vmatpush.msra.mxu1 %v913_v15 }
  0x74   : > { %2188 = vmatpush.msra.mxu2 %v913_v15 }
  0x75   : > { %943 = vmatpush.msra.mxu1 %v912_v16 }
  0x76   : > { %2189 = vmatpush.msra.mxu2 %v912_v16 }
  0x77   : > { %944 = vmatpush.msra.mxu1 %v911_v17 }
  0x78   : > { %2190 = vmatpush.msra.mxu2 %v911_v17 }
  0x79   : > { %945 = vmatpush.msra.mxu1 %v910_v18 }
  0x7a   : > { %2191 = vmatpush.msra.mxu2 %v910_v18 }
  0xdc   : > { %v902_v20 = vpop.f32.mrf.mxu0 }
  0xdd   : > { %v903_v21 = vadd.f32 %v2433_v19, %v902_v20 }
  0xdf   : > { %v908_v22 = vmax.f32 %v903_v21, 0.0 }
  0xe1   : > { %946 = vmatmul.f32.vlgmr.msra.gmra.mxu1 %v908_v22 }
  0xe4   : > { %v905_v23 = vpop.f32.mrf.mxu0 }
  0xe5   : > { %v906_v24 = vadd.f32 %v2433_v19, %v905_v23 }
  0xe7   : > { %v909_v25 = vmax.f32 %v906_v24, 0.0 }
  0xe9   : > { %949 = vmatmul.f32.vlgmr.msra.gmra.mxu2 %v909_v25 }
 0x15e   : > { %v947_v27 = vpop.f32.mrf.mxu1 }
 0x15f   : > { %v948_v28 = vadd.f32 %v2434_v26, %v947_v27 }
 0x161   : > { %955 = vadd.xlane.f32.xlu0 %v948_v28 }
 0x16c   : > { %v950_v29 = vpop.f32.mrf.mxu2 }
 0x16d   : > { %v951_v30 = vadd.f32 %v2434_v26, %v950_v29 }
 0x16f   : > { %957 = vadd.xlane.f32.xlu0 %v951_v30 }
 0x1d4   : > { %v956_v33 = vpop.xlane.xlu0 %955 }
 0x1d5   : > { %v959_v34 = vmul.f32 0.03125, %v956_v33 }
 0x1d7   : > { %v964_v35 = vsub.f32 %v948_v28, %v959_v34 }
 0x1d9   : > { %v966_v36 = vsel %vm963_vm1, %v964_v35, 0.0 }
 0x1da   : > { %v968_v37 = vmul.f32 %v966_v36, %v966_v36 }
 0x1dc   : > { %970 = vadd.xlane.f32.xlu1 %v968_v37 }
 0x1e2   : > { %v958_v38 = vpop.xlane.xlu0 %957 }
 0x1e3   : > { %v960_v39 = vmul.f32 0.03125, %v958_v38 }
 0x1e5   : > { %v965_v40 = vsub.f32 %v951_v30, %v960_v39 }
 0x1e7   : > { %v967_v41 = vsel %vm963_vm1, %v965_v40, 0.0 }
 0x1e8   : > { %v969_v42 = vmul.f32 %v967_v41, %v967_v41 }
 0x1ea   : > { %972 = vadd.xlane.f32.xlu1 %v969_v42 }
 0x24f   : > { %v971_v43 = vpop.xlane.xlu1 %970 }
 0x250   : > { %v974_v44 = vmul.f32 0.03125, %v971_v43 }
 0x252   : > { %v976_v45 = vadd.f32 1e-05, %v974_v44 }
 0x254   : > { %2437 = vrsqrt.f32 %v976_v45  ;;  %vm984_vm3 = vweird.f32 %v976_v45 }
 0x25a   : > { %v2438_v46 = vpop.eup %2437 }
 0x25b   : > { %v979_v47 = vmul.f32 %v2438_v46, %v976_v45  ;;  %vm985_vm2 = vweird.f32 %v2438_v46 }
 0x25c   : > { %vm986_vm4 = vmor %vm984_vm3, %vm985_vm2 }
 0x25d   : > { %v980_v48 = vmul.f32 %v2438_v46, %v979_v47  ;;  %v973_v49 = vpop.xlane.xlu1 %972 }
 0x25e   : > { %v975_v50 = vmul.f32 0.03125, %v973_v49 }
 0x25f   : > { %v981_v51 = vmul.f32 0.5, %v980_v48 }
 0x260   : > { %v977_v52 = vadd.f32 1e-05, %v975_v50 }
 0x261   : > { %v982_v53 = vsub.f32 1.5, %v981_v51 }
 0x262   : > { %2439 = vrsqrt.f32 %v977_v52  ;;  %vm994_vm6 = vweird.f32 %v977_v52 }
 0x263   : > { %v983_v54 = vmul.f32 %v2438_v46, %v982_v53 }
 0x265   : > { %v987_v56 = vsel %vm986_vm4, %v2438_v46, %v983_v54 }
 0x266   : > { %v998_v58 = vmul.f32 %v987_v56, %v964_v35 }
 0x268   : > { %v2440_v59 = vpop.eup %2439  ;;  %v1003_v60 = vmul.f32 %v2435_v55, %v998_v58 }
 0x269   : > { %v989_v61 = vmul.f32 %v2440_v59, %v977_v52  ;;  %vm995_vm5 = vweird.f32 %v2440_v59 }
 0x26a   : > { %v1008_v62 = vadd.f32 %v2436_v57, %v1003_v60  ;;  %vm996_vm7 = vmor %vm994_vm6, %vm995_vm5 }
 0x26b   : > { %v990_v63 = vmul.f32 %v2440_v59, %v989_v61 }
 0x26c   : > { %1010 = vst [vmem:[#allocation2] sm:$0xff] %v1008_v62 }
 0x26d   : > { %v991_v0 = vmul.f32 0.5, %v990_v63 }
 0x26f   : > { %v992_v1 = vsub.f32 1.5, %v991_v0 }
 0x271   : > { %v993_v2 = vmul.f32 %v2440_v59, %v992_v1 }
 0x273   : > { %v997_v3 = vsel %vm996_vm7, %v2440_v59, %v993_v2 }
 0x274   : > { %v999_v4 = vmul.f32 %v997_v3, %v965_v40 }
 0x276   : > { %v1004_v5 = vmul.f32 %v2435_v55, %v999_v4 }
 0x278   : > { %v1009_v6 = vadd.f32 %v2436_v57, %v1004_v5 }
 0x27a   : > { %1011 = vst [vmem:[#allocation2 + $0x8] sm:$0xff] %v1009_v6 }
 0x27b PF: > { %s2053_s11 = sshll.u32 %s2717_s30, 4  ;;  %p2054_p8 = scmp.ne.s32.totalorder %s2721_s4, 0 }
 0x27c   : > { %s3361_s12 = sld [smem:[#allocation34_spill]] (!%p2054_p8)  ;;  %s1155_s19 = scalar_lea.vmem (!%p2054_p8), [#allocation3], %s2053_s11 }
 0x27d   : > { %1015 = sbr.rel (%p2054_p8) target bundleno = 1184 (0x4a0), region = 136  ;;  %s3362_s27 = sld [smem:[#allocation36_spill]] (!%p2054_p8) }
 0x27e   : > { %s3363_s15 = sld [smem:[#allocation37_spill]] (!%p2054_p8) }
 0x27f   : > { %s3364_s26 = sld [smem:[#allocation38_spill]] (!%p2054_p8) }
 0x282   : > { %v1018_v7 = vld [vmem:[%s3304_s10] sm:$0xff]  ;;  %vm1023_vm8 = vcmask 64512   ;;  %v1070_v9 = vld [vmem:[#allocation10 + $0x78] sm:$0xff]  ;;  %v1069_v10 = vld [vmem:[#allocation10 + $0x70] sm:$0xff]  ;;  %v1106_v38 = vlaneseq }
 0x283   : > { %v1016_v8 = vld [vmem:[%s3032_s16] sm:$0xff]  ;;  %1045 = vmatpush.msra.mxu0 %v1018_v7  ;;  %1075 = vmatpush.msra.mxu1 %v1070_v9  ;;  %v1068_v11 = vld [vmem:[#allocation10 + $0x68] sm:$0xff]  ;;  %v1066_v14 = vld [vmem:[#allocation10 + $0x58] sm:$0xff] }
 0x284   : > { %2055 = vmatmul.msk.f32.vlgmr.msra.gmra.mxu0 %vm1023_vm8, %v1016_v8  ;;  %2192 = vmatpush.msra.mxu2 %v1070_v9  ;;  %v1067_v12 = vld [vmem:[#allocation10 + $0x60] sm:$0xff]  ;;  %v1017_v13 = vld [vmem:[%s3032_s16 + $0x8] sm:$0xff]  ;;  %v1065_v15 = vld [vmem:[#allocation10 + $0x50] sm:$0xff]  ;;  %v1107_v39 = vand.u32 127, %v1106_v38 }
 0x285   : > { %1076 = vmatpush.msra.mxu1 %v1069_v10  ;;  %v1064_v16 = vld [vmem:[#allocation10 + $0x48] sm:$0xff]  ;;  %v1063_v17 = vld [vmem:[#allocation10 + $0x40] sm:$0xff]  ;;  %v1062_v18 = vld [vmem:[#allocation10 + $0x38] sm:$0xff] }
 0x286   : > { %2193 = vmatpush.msra.mxu2 %v1069_v10  ;;  %v1061_v19 = vld [vmem:[#allocation10 + $0x30] sm:$0xff]  ;;  %v1060_v20 = vld [vmem:[#allocation10 + $0x28] sm:$0xff]  ;;  %v1059_v21 = vld [vmem:[#allocation10 + $0x20] sm:$0xff]  ;;  %vm1108_vm9 = vcmp.lt.s32.totalorder %v1107_v39, 32 }
 0x287   : > { %1077 = vmatpush.msra.mxu1 %v1068_v11  ;;  %v1058_v22 = vld [vmem:[#allocation10 + $0x18] sm:$0xff]  ;;  %v1057_v23 = vld [vmem:[#allocation10 + $0x10] sm:$0xff]  ;;  %v1056_v24 = vld [vmem:[#allocation10 + $0x8] sm:$0xff] }
 0x288   : > { %2194 = vmatpush.msra.mxu2 %v1068_v11  ;;  %v1055_v25 = vld [vmem:[#allocation10] sm:$0xff] }
 0x289   : > { %1078 = vmatpush.msra.mxu1 %v1067_v12  ;;  %v2441_v26 = vld [vmem:[%s3361_s12] ss:$0 sm:$0xff] }
 0x28a   : > { %2195 = vmatpush.msra.mxu2 %v1067_v12  ;;  %v2442_v33 = vld [vmem:[%s3362_s27] ss:$0 sm:$0xff] }
 0x28b   : > { %1079 = vmatpush.msra.mxu1 %v1066_v14  ;;  %v2443_v62 = vld [vmem:[%s3363_s15] ss:$0 sm:$0xff] }
 0x28c   : > { %2056 = vmatmul.msk.f32.gmra.mxu0 %vm1023_vm8, %v1017_v13  ;;  %2196 = vmatpush.msra.mxu2 %v1066_v14  ;;  %v2444_v0 = vld [vmem:[%s3364_s26] ss:$0 sm:$0xff] }
 0x28d   : > { %1080 = vmatpush.msra.mxu1 %v1065_v15 }
 0x28e   : > { %2197 = vmatpush.msra.mxu2 %v1065_v15 }
 0x28f   : > { %1081 = vmatpush.msra.mxu1 %v1064_v16 }
 0x290   : > { %2198 = vmatpush.msra.mxu2 %v1064_v16 }
 0x291   : > { %1082 = vmatpush.msra.mxu1 %v1063_v17 }
 0x292   : > { %2199 = vmatpush.msra.mxu2 %v1063_v17 }
 0x293   : > { %1083 = vmatpush.msra.mxu1 %v1062_v18 }
 0x294   : > { %2200 = vmatpush.msra.mxu2 %v1062_v18 }
 0x295   : > { %1084 = vmatpush.msra.mxu1 %v1061_v19 }
 0x296   : > { %2201 = vmatpush.msra.mxu2 %v1061_v19 }
 0x297   : > { %1085 = vmatpush.msra.mxu1 %v1060_v20 }
 0x298   : > { %2202 = vmatpush.msra.mxu2 %v1060_v20 }
 0x299   : > { %1086 = vmatpush.msra.mxu1 %v1059_v21 }
 0x29a   : > { %2203 = vmatpush.msra.mxu2 %v1059_v21 }
 0x29b   : > { %1087 = vmatpush.msra.mxu1 %v1058_v22 }
 0x29c   : > { %2204 = vmatpush.msra.mxu2 %v1058_v22 }
 0x29d   : > { %1088 = vmatpush.msra.mxu1 %v1057_v23 }
 0x29e   : > { %2205 = vmatpush.msra.mxu2 %v1057_v23 }
 0x29f   : > { %1089 = vmatpush.msra.mxu1 %v1056_v24 }
 0x2a0   : > { %2206 = vmatpush.msra.mxu2 %v1056_v24 }
 0x2a1   : > { %1090 = vmatpush.msra.mxu1 %v1055_v25 }
 0x2a2   : > { %2207 = vmatpush.msra.mxu2 %v1055_v25 }
 0x301   : > { %v1047_v27 = vpop.f32.mrf.mxu0 }
 0x302   : > { %v1048_v28 = vadd.f32 %v2441_v26, %v1047_v27 }
 0x304   : > { %v1053_v29 = vmax.f32 %v1048_v28, 0.0 }
 0x306   : > { %1091 = vmatmul.f32.vlgmr.msra.gmra.mxu1 %v1053_v29 }
 0x309   : > { %v1050_v30 = vpop.f32.mrf.mxu0 }
 0x30a   : > { %v1051_v31 = vadd.f32 %v2441_v26, %v1050_v30 }
 0x30c   : > { %v1054_v32 = vmax.f32 %v1051_v31, 0.0 }
 0x30e   : > { %1094 = vmatmul.f32.vlgmr.msra.gmra.mxu2 %v1054_v32 }
 0x383   : > { %v1092_v34 = vpop.f32.mrf.mxu1 }
 0x384   : > { %v1093_v35 = vadd.f32 %v2442_v33, %v1092_v34 }
 0x386   : > { %1100 = vadd.xlane.f32.xlu0 %v1093_v35 }
 0x391   : > { %v1095_v36 = vpop.f32.mrf.mxu2 }
 0x392   : > { %v1096_v37 = vadd.f32 %v2442_v33, %v1095_v36 }
 0x394   : > { %1102 = vadd.xlane.f32.xlu0 %v1096_v37 }
 0x3f9   : > { %v1101_v40 = vpop.xlane.xlu0 %1100 }
 0x3fa   : > { %v1104_v41 = vmul.f32 0.03125, %v1101_v40 }
 0x3fc   : > { %v1109_v42 = vsub.f32 %v1093_v35, %v1104_v41 }
 0x3fe   : > { %v1111_v43 = vsel %vm1108_vm9, %v1109_v42, 0.0 }
 0x3ff   : > { %v1113_v44 = vmul.f32 %v1111_v43, %v1111_v43 }
 0x401   : > { %1115 = vadd.xlane.f32.xlu1 %v1113_v44 }
 0x407   : > { %v1103_v45 = vpop.xlane.xlu0 %1102 }
 0x408   : > { %v1105_v46 = vmul.f32 0.03125, %v1103_v45 }
 0x40a   : > { %v1110_v47 = vsub.f32 %v1096_v37, %v1105_v46 }
 0x40c   : > { %v1112_v48 = vsel %vm1108_vm9, %v1110_v47, 0.0 }
 0x40d   : > { %v1114_v49 = vmul.f32 %v1112_v48, %v1112_v48 }
 0x40f   : > { %1117 = vadd.xlane.f32.xlu1 %v1114_v49 }
 0x474   : > { %v1116_v50 = vpop.xlane.xlu1 %1115 }
 0x475   : > { %v1119_v51 = vmul.f32 0.03125, %v1116_v50 }
 0x477   : > { %v1121_v52 = vadd.f32 1e-05, %v1119_v51 }
 0x479   : > { %2445 = vrsqrt.f32 %v1121_v52  ;;  %vm1129_vm11 = vweird.f32 %v1121_v52 }
 0x47f   : > { %v2446_v53 = vpop.eup %2445 }
 0x480   : > { %v1124_v54 = vmul.f32 %v2446_v53, %v1121_v52  ;;  %vm1130_vm10 = vweird.f32 %v2446_v53 }
 0x481   : > { %vm1131_vm12 = vmor %vm1129_vm11, %vm1130_vm10 }
 0x482   : > { %v1125_v55 = vmul.f32 %v2446_v53, %v1124_v54  ;;  %v1118_v56 = vpop.xlane.xlu1 %1117 }
 0x483   : > { %v1120_v57 = vmul.f32 0.03125, %v1118_v56 }
 0x484   : > { %v1126_v58 = vmul.f32 0.5, %v1125_v55 }
 0x485   : > { %v1122_v59 = vadd.f32 1e-05, %v1120_v57 }
 0x486   : > { %v1127_v60 = vsub.f32 1.5, %v1126_v58 }
 0x487   : > { %2447 = vrsqrt.f32 %v1122_v59  ;;  %vm1139_vm14 = vweird.f32 %v1122_v59 }
 0x488   : > { %v1128_v61 = vmul.f32 %v2446_v53, %v1127_v60 }
 0x48a   : > { %v1132_v63 = vsel %vm1131_vm12, %v2446_v53, %v1128_v61 }
 0x48b   : > { %v1143_v1 = vmul.f32 %v1132_v63, %v1109_v42 }
 0x48d   : > { %v2448_v2 = vpop.eup %2447  ;;  %v1148_v3 = vmul.f32 %v2443_v62, %v1143_v1 }
 0x48e   : > { %v1134_v4 = vmul.f32 %v2448_v2, %v1122_v59  ;;  %vm1140_vm13 = vweird.f32 %v2448_v2 }
 0x48f   : > { %v1153_v5 = vadd.f32 %v2444_v0, %v1148_v3  ;;  %vm1141_vm15 = vmor %vm1139_vm14, %vm1140_vm13 }
 0x490   : > { %v1135_v6 = vmul.f32 %v2448_v2, %v1134_v4 }
 0x491   : > { %1156 = vst [vmem:[%s1155_s19] sm:$0xff] %v1153_v5 }
 0x492   : > { %v1136_v7 = vmul.f32 0.5, %v1135_v6 }
 0x494   : > { %v1137_v8 = vsub.f32 1.5, %v1136_v7 }
 0x496   : > { %v1138_v9 = vmul.f32 %v2448_v2, %v1137_v8 }
 0x498   : > { %v1142_v10 = vsel %vm1141_vm15, %v2448_v2, %v1138_v9 }
 0x499   : > { %v1144_v11 = vmul.f32 %v1142_v10, %v1110_v47 }
 0x49b   : > { %v1149_v12 = vmul.f32 %v2443_v62, %v1144_v11 }
 0x49d   : > { %v1154_v13 = vadd.f32 %v2444_v0, %v1149_v12 }
 0x49f   : > { %1157 = vst [vmem:[%s1155_s19 + $0x8] sm:$0xff] %v1154_v13 }
 0x4a0 PF: > { %p2057_p9 = scmp.ne.s32.totalorder %s2717_s30, 0 }
 0x4a2   : > { %1160 = sbr.rel (%p2057_p9) target bundleno = 1357 (0x54d), region = 140 }
 0x4a7   : > { %v1180_v14 = vld [vmem:[%s2995_s1 + $0x78] sm:$0xff]  ;;  %v1179_v16 = vld [vmem:[%s2995_s1 + $0x70] sm:$0xff]  ;;  %v2741_v18 = vmov 0.0   ;;  %v1178_v19 = vld [vmem:[%s2995_s1 + $0x68] sm:$0xff] }
 0x4a8   : > { %v2073_v15 = vld [vmem:[%s2995_s1 + $0xf8] sm:$0xff]  ;;  %2208 = vmatpush.msra.mxu2 %v1180_v14  ;;  %v2072_v17 = vld [vmem:[%s2995_s1 + $0xf0] sm:$0xff]  ;;  %1161 = vst [vmem:[#allocation4 + $0x8] sm:$0xff] %v2741_v18  ;;  %v2071_v20 = vld [vmem:[%s2995_s1 + $0xe8] sm:$0xff]  ;;  %1181 = vmatpush.msra.mxu0 %v1180_v14 }
 0x4a9   : > { %2224 = vmatpush.msra.mxu3 %v2073_v15  ;;  %1162 = vst [vmem:[#allocation4] sm:$0xff] %v2741_v18  ;;  %1225 = vmatpush.msra.mxu1 %v2073_v15  ;;  %v1177_v21 = vld [vmem:[%s2995_s1 + $0x60] sm:$0xff]  ;;  %v1176_v23 = vld [vmem:[%s2995_s1 + $0x58] sm:$0xff]  ;;  %v1175_v25 = vld [vmem:[%s2995_s1 + $0x50] sm:$0xff] }
 0x4aa   : > { %2209 = vmatpush.msra.mxu2 %v1179_v16  ;;  %v2070_v22 = vld [vmem:[%s2995_s1 + $0xe0] sm:$0xff]  ;;  %1182 = vmatpush.msra.mxu0 %v1179_v16  ;;  %v2069_v24 = vld [vmem:[%s2995_s1 + $0xd8] sm:$0xff]  ;;  %v2068_v26 = vld [vmem:[%s2995_s1 + $0xd0] sm:$0xff] }
 0x4ab   : > { %2225 = vmatpush.msra.mxu3 %v2072_v17  ;;  %1226 = vmatpush.msra.mxu1 %v2072_v17  ;;  %v1174_v27 = vld [vmem:[%s2995_s1 + $0x48] sm:$0xff]  ;;  %v1173_v29 = vld [vmem:[%s2995_s1 + $0x40] sm:$0xff]  ;;  %v1172_v31 = vld [vmem:[%s2995_s1 + $0x38] sm:$0xff] }
 0x4ac   : > { %2210 = vmatpush.msra.mxu2 %v1178_v19  ;;  %1183 = vmatpush.msra.mxu0 %v1178_v19  ;;  %v2067_v28 = vld [vmem:[%s2995_s1 + $0xc8] sm:$0xff]  ;;  %v2066_v30 = vld [vmem:[%s2995_s1 + $0xc0] sm:$0xff]  ;;  %v2065_v32 = vld [vmem:[%s2995_s1 + $0xb8] sm:$0xff] }
 0x4ad   : > { %2226 = vmatpush.msra.mxu3 %v2071_v20  ;;  %1227 = vmatpush.msra.mxu1 %v2071_v20  ;;  %v1171_v33 = vld [vmem:[%s2995_s1 + $0x30] sm:$0xff]  ;;  %v1170_v35 = vld [vmem:[%s2995_s1 + $0x28] sm:$0xff]  ;;  %v1169_v37 = vld [vmem:[%s2995_s1 + $0x20] sm:$0xff] }
 0x4ae   : > { %2211 = vmatpush.msra.mxu2 %v1177_v21  ;;  %1184 = vmatpush.msra.mxu0 %v1177_v21  ;;  %v2064_v34 = vld [vmem:[%s2995_s1 + $0xb0] sm:$0xff]  ;;  %v2063_v36 = vld [vmem:[%s2995_s1 + $0xa8] sm:$0xff]  ;;  %v2062_v38 = vld [vmem:[%s2995_s1 + $0xa0] sm:$0xff] }
 0x4af   : > { %2227 = vmatpush.msra.mxu3 %v2070_v22  ;;  %1228 = vmatpush.msra.mxu1 %v2070_v22  ;;  %v1168_v39 = vld [vmem:[%s2995_s1 + $0x18] sm:$0xff]  ;;  %v1167_v41 = vld [vmem:[%s2995_s1 + $0x10] sm:$0xff]  ;;  %v1166_v43 = vld [vmem:[%s2995_s1 + $0x8] sm:$0xff] }
 0x4b0   : > { %2212 = vmatpush.msra.mxu2 %v1176_v23  ;;  %1185 = vmatpush.msra.mxu0 %v1176_v23  ;;  %v2061_v40 = vld [vmem:[%s2995_s1 + $0x98] sm:$0xff]  ;;  %v2060_v42 = vld [vmem:[%s2995_s1 + $0x90] sm:$0xff]  ;;  %v2059_v44 = vld [vmem:[%s2995_s1 + $0x88] sm:$0xff] }
 0x4b1   : > { %2228 = vmatpush.msra.mxu3 %v2069_v24  ;;  %1229 = vmatpush.msra.mxu1 %v2069_v24  ;;  %v1165_v45 = vld [vmem:[%s2995_s1] sm:$0xff]  ;;  %v1164_v47 = vld [vmem:[#allocation2 + $0x8] sm:$0xff] }
 0x4b2   : > { %2213 = vmatpush.msra.mxu2 %v1175_v25  ;;  %1186 = vmatpush.msra.mxu0 %v1175_v25  ;;  %v2058_v46 = vld [vmem:[%s2995_s1 + $0x80] sm:$0xff] }
 0x4b3   : > { %2229 = vmatpush.msra.mxu3 %v2068_v26  ;;  %1230 = vmatpush.msra.mxu1 %v2068_v26  ;;  %v1163_v48 = vld [vmem:[#allocation2] sm:$0xff] }
 0x4b4   : > { %2214 = vmatpush.msra.mxu2 %v1174_v27  ;;  %1187 = vmatpush.msra.mxu0 %v1174_v27 }
 0x4b5   : > { %2230 = vmatpush.msra.mxu3 %v2067_v28  ;;  %1231 = vmatpush.msra.mxu1 %v2067_v28 }
 0x4b6   : > { %2215 = vmatpush.msra.mxu2 %v1173_v29  ;;  %1188 = vmatpush.msra.mxu0 %v1173_v29 }
 0x4b7   : > { %2231 = vmatpush.msra.mxu3 %v2066_v30  ;;  %1232 = vmatpush.msra.mxu1 %v2066_v30 }
 0x4b8   : > { %2216 = vmatpush.msra.mxu2 %v1172_v31  ;;  %1189 = vmatpush.msra.mxu0 %v1172_v31 }
 0x4b9   : > { %2232 = vmatpush.msra.mxu3 %v2065_v32  ;;  %1233 = vmatpush.msra.mxu1 %v2065_v32 }
 0x4ba   : > { %2217 = vmatpush.msra.mxu2 %v1171_v33  ;;  %1190 = vmatpush.msra.mxu0 %v1171_v33 }
 0x4bb   : > { %2233 = vmatpush.msra.mxu3 %v2064_v34  ;;  %1234 = vmatpush.msra.mxu1 %v2064_v34 }
 0x4bc   : > { %2218 = vmatpush.msra.mxu2 %v1170_v35  ;;  %1191 = vmatpush.msra.mxu0 %v1170_v35 }
 0x4bd   : > { %2234 = vmatpush.msra.mxu3 %v2063_v36  ;;  %1235 = vmatpush.msra.mxu1 %v2063_v36 }
 0x4be   : > { %2219 = vmatpush.msra.mxu2 %v1169_v37  ;;  %1192 = vmatpush.msra.mxu0 %v1169_v37 }
 0x4bf   : > { %2235 = vmatpush.msra.mxu3 %v2062_v38  ;;  %1236 = vmatpush.msra.mxu1 %v2062_v38 }
 0x4c0   : > { %2220 = vmatpush.msra.mxu2 %v1168_v39  ;;  %1193 = vmatpush.msra.mxu0 %v1168_v39 }
 0x4c1   : > { %2236 = vmatpush.msra.mxu3 %v2061_v40  ;;  %1237 = vmatpush.msra.mxu1 %v2061_v40 }
 0x4c2   : > { %2221 = vmatpush.msra.mxu2 %v1167_v41  ;;  %1194 = vmatpush.msra.mxu0 %v1167_v41 }
 0x4c3   : > { %2237 = vmatpush.msra.mxu3 %v2060_v42  ;;  %1238 = vmatpush.msra.mxu1 %v2060_v42 }
 0x4c4   : > { %2222 = vmatpush.msra.mxu2 %v1166_v43  ;;  %1195 = vmatpush.msra.mxu0 %v1166_v43 }
 0x4c5   : > { %2238 = vmatpush.msra.mxu3 %v2059_v44  ;;  %1239 = vmatpush.msra.mxu1 %v2059_v44 }
 0x4c6   : > { %2223 = vmatpush.msra.mxu2 %v1165_v45  ;;  %1196 = vmatpush.msra.mxu0 %v1165_v45 }
 0x4c7   : > { %2239 = vmatpush.msra.mxu3 %v2058_v46  ;;  %1200 = vmatmul.f32.vlgmr.msra.gmra.mxu2 %v1164_v47 }
 0x4c8   : > { %1244 = vmatmul.f32.vlgmr.msra.gmra.mxu3 %v1164_v47  ;;  %1240 = vmatpush.msra.mxu1 %v2058_v46 }
 0x4c9   : > { %1197 = vmatmul.f32.vlgmr.msra.gmra.mxu0 %v1163_v48  ;;  %1241 = vmatmul.f32.vlgmr.msra.gmra.mxu1 %v1163_v48 }
 0x546   : > { %v1198_v49 = vpop.f32.mrf.mxu0  ;;  %v1242_v50 = vpop.f32.mrf.mxu1 }
 0x547   : > { %1204 = vst [vmem:[#allocation5 + $0x8] sm:$0xff] %v1198_v49 }
 0x548   : > { %1248 = vst [vmem:[#allocation6] sm:$0xff] %v1242_v50 }
 0x54a   : > { %v1201_v51 = vpop.f32.mrf.mxu2 }
 0x54b   : > { %v1245_v52 = vpop.f32.mrf.mxu3  ;;  %1205 = vst [vmem:[#allocation5] sm:$0xff] %v1201_v51 }
 0x54c   : > { %1249 = vst [vmem:[#allocation6 + $0x8] sm:$0xff] %v1245_v52 }
 0x54d PF: > { %v1269_v53 = vld [vmem:[%s3024_s14] sm:$0xff]  ;;  %v2742_v55 = vmov 0   ;;  %v2097_v56 = vld [vmem:[%s2995_s1 + $0x178] sm:$0xff]  ;;  %v2096_v57 = vld [vmem:[%s2995_s1 + $0x170] sm:$0xff]  ;;  %v1253_v19 = vlaneseq  ;;  %vm1287_vm0 = vcmask 130048   ;;  %v2743_v23 = vmov 0.0  }
 0x54e   : > { %v1255_v54 = vld [vmem:[%s3019_s2] sm:$0xff]  ;;  %2450 = vset.pattern.permute.xlu1 %v2742_v55  ;;  %2449 = vset.pattern.permute.xlu0 %v2742_v55  ;;  %v1283_v59 = vld [vmem:[#allocation5 + $0x8] sm:$0xff]  ;;  %v2093_v1 = vld [vmem:[%s2995_s1 + $0x158] sm:$0xff]  ;;  %p1569_p10 = scmp.eq.s32.totalorder %s2717_s30, 1  ;;  %p2119_p11 = scmp.ne.s32.totalorder %s2717_s30, 1 }
 0x54f   : > { %1272 = vperm.xlu1 %2450, %v1269_v53   ;;  %1258 = vperm.xlu0 %2449, %v1255_v54   ;;  %v2095_v60 = vld [vmem:[%s2995_s1 + $0x168] sm:$0xff]  ;;  %v2094_v63 = vld [vmem:[%s2995_s1 + $0x160] sm:$0xff]  ;;  %v2092_v2 = vld [vmem:[%s2995_s1 + $0x150] sm:$0xff]  ;;  %v3150_v20 = vand.u32 127, %v1253_v19 }
 0x550   : > { %2240 = vmatpush.msra.mxu2 %v2097_v56  ;;  %v1270_v61 = vld [vmem:[%s3024_s14 + $0x8] sm:$0xff]  ;;  %v2090_v4 = vld [vmem:[%s2995_s1 + $0x140] sm:$0xff]  ;;  %v2089_v5 = vld [vmem:[%s2995_s1 + $0x138] sm:$0xff] }
 0x551   : > { %v1256_v62 = vld [vmem:[%s3019_s2 + $0x8] sm:$0xff]  ;;  %v2088_v6 = vld [vmem:[%s2995_s1 + $0x130] sm:$0xff]  ;;  %v2086_v8 = vld [vmem:[%s2995_s1 + $0x120] sm:$0xff]  ;;  %s3140_s2 = scalar_lea.vmem [#allocation3], %s2053_s11  ;;  %vm1451_vm5 = vcmp.lt.s32.totalorder %v3150_v20, 32 }
 0x552   : > { %v1284_v58 = vld [vmem:[#allocation5] sm:$0xff]  ;;  %2241 = vmatpush.msra.mxu2 %v2096_v57  ;;  %v2091_v3 = vld [vmem:[%s2995_s1 + $0x148] sm:$0xff]  ;;  %v2085_v9 = vld [vmem:[%s2995_s1 + $0x118] sm:$0xff] }
 0x553   : > { %1337 = vmatpush.msra.mxu1 %v1284_v58  ;;  %v1286_v0 = vld [vmem:[#allocation6 + $0x8] sm:$0xff]  ;;  %v2087_v7 = vld [vmem:[%s2995_s1 + $0x128] sm:$0xff]  ;;  %v1285_v10 = vld [vmem:[#allocation6] sm:$0xff] }
 0x554   : > { %2242 = vmatpush.msra.mxu2 %v2095_v60  ;;  %1308 = vmatpush.msra.mxu0 %v1286_v0  ;;  %v2084_v11 = vld [vmem:[%s2995_s1 + $0x110] sm:$0xff]  ;;  %v2083_v12 = vld [vmem:[%s2995_s1 + $0x108] sm:$0xff]  ;;  %v2082_v13 = vld [vmem:[%s2995_s1 + $0x100] sm:$0xff] }
 0x555   : > { %1338 = vmatpush.msra.mxu1 %v1283_v59  ;;  %v3143_v14 = vld [vmem:[%s3140_s2 + $0x8] sm:$0xff]  ;;  %v2113_v15 = vld [vmem:[%s2995_s1 + $0x1f8] sm:$0xff]  ;;  %v2112_v16 = vld [vmem:[%s2995_s1 + $0x1f0] sm:$0xff] }
 0x556   : > { %2243 = vmatpush.msra.mxu2 %v2094_v63  ;;  %1309 = vmatpush.msra.mxu0 %v1285_v10  ;;  %v2111_v17 = vld [vmem:[%s2995_s1 + $0x1e8] sm:$0xff]  ;;  %v2110_v18 = vld [vmem:[%s2995_s1 + $0x1e0] sm:$0xff]  ;;  %v2109_v31 = vld [vmem:[%s2995_s1 + $0x1d8] sm:$0xff] }
 0x557   : > { %1363 = vmatpush.msrb.mxu1 %v2097_v56  ;;  %1275 = vperm.xlu1 %2450, %v1270_v61   ;;  %v3161_v30 = vld [vmem:[%s3140_s2] sm:$0xff]  ;;  %v2108_v32 = vld [vmem:[%s2995_s1 + $0x1d0] sm:$0xff]  ;;  %v2107_v33 = vld [vmem:[%s2995_s1 + $0x1c8] sm:$0xff] }
 0x558   : > { %1261 = vperm.xlu0 %2449, %v1256_v62   ;;  %2244 = vmatpush.msra.mxu2 %v2093_v1  ;;  %v2106_v34 = vld [vmem:[%s2995_s1 + $0x1c0] sm:$0xff]  ;;  %v2105_v35 = vld [vmem:[%s2995_s1 + $0x1b8] sm:$0xff]  ;;  %v2104_v36 = vld [vmem:[%s2995_s1 + $0x1b0] sm:$0xff] }
 0x559   : > { %1364 = vmatpush.msrb.mxu1 %v2096_v57  ;;  %1418 = vmatpush.msra.mxu3 %v2113_v15  ;;  %v2103_v37 = vld [vmem:[%s2995_s1 + $0x1a8] sm:$0xff]  ;;  %v2102_v38 = vld [vmem:[%s2995_s1 + $0x1a0] sm:$0xff]  ;;  %v2101_v39 = vld [vmem:[%s2995_s1 + $0x198] sm:$0xff] }
 0x55a   : > { %2245 = vmatpush.msra.mxu2 %v2092_v2  ;;  %v2100_v40 = vld [vmem:[%s2995_s1 + $0x190] sm:$0xff]  ;;  %v2099_v41 = vld [vmem:[%s2995_s1 + $0x188] sm:$0xff]  ;;  %v2098_v42 = vld [vmem:[%s2995_s1 + $0x180] sm:$0xff] }
 0x55b   : > { %1365 = vmatpush.msrb.mxu1 %v2095_v60  ;;  %1419 = vmatpush.msra.mxu3 %v2112_v16  ;;  %v2451_v51 = vld [vmem:[%s3037_s21] ss:$0 sm:$0xff]  ;;  %v2452_v59 = vld [vmem:[%s3037_s21 + $0x1] ss:$0 sm:$0xff] }
 0x55c   : > { %2246 = vmatpush.msra.mxu2 %v2091_v3 }
 0x55d   : > { %1366 = vmatpush.msrb.mxu1 %v2094_v63  ;;  %1420 = vmatpush.msra.mxu3 %v2111_v17 }
 0x55e   : > { %2247 = vmatpush.msra.mxu2 %v2090_v4 }
 0x55f   : > { %1367 = vmatpush.msrb.mxu1 %v2093_v1  ;;  %1421 = vmatpush.msra.mxu3 %v2110_v18 }
 0x560   : > { %2248 = vmatpush.msra.mxu2 %v2089_v5 }
 0x561   : > { %1368 = vmatpush.msrb.mxu1 %v2092_v2  ;;  %1422 = vmatpush.msra.mxu3 %v2109_v31 }
 0x562   : > { %2249 = vmatpush.msra.mxu2 %v2088_v6 }
 0x563   : > { %1369 = vmatpush.msrb.mxu1 %v2091_v3  ;;  %1423 = vmatpush.msra.mxu3 %v2108_v32 }
 0x564   : > { %2250 = vmatpush.msra.mxu2 %v2087_v7 }
 0x565   : > { %1370 = vmatpush.msrb.mxu1 %v2090_v4  ;;  %1424 = vmatpush.msra.mxu3 %v2107_v33 }
 0x566   : > { %2251 = vmatpush.msra.mxu2 %v2086_v8 }
 0x567   : > { %1371 = vmatpush.msrb.mxu1 %v2089_v5  ;;  %1425 = vmatpush.msra.mxu3 %v2106_v34 }
 0x568   : > { %2252 = vmatpush.msra.mxu2 %v2085_v9 }
 0x569   : > { %1372 = vmatpush.msrb.mxu1 %v2088_v6  ;;  %1426 = vmatpush.msra.mxu3 %v2105_v35 }
 0x56a   : > { %2253 = vmatpush.msra.mxu2 %v2084_v11 }
 0x56b   : > { %1373 = vmatpush.msrb.mxu1 %v2087_v7  ;;  %1427 = vmatpush.msra.mxu3 %v2104_v36 }
 0x56c   : > { %2254 = vmatpush.msra.mxu2 %v2083_v12 }
 0x56d   : > { %1374 = vmatpush.msrb.mxu1 %v2086_v8  ;;  %1428 = vmatpush.msra.mxu3 %v2103_v37 }
 0x56e   : > { %2255 = vmatpush.msra.mxu2 %v2082_v13 }
 0x56f   : > { %1375 = vmatpush.msrb.mxu1 %v2085_v9  ;;  %1382 = vmatmul.f32.vlgmr.msra.gmra.mxu2 %v3143_v14 }
 0x570   : > { %1429 = vmatpush.msra.mxu3 %v2102_v38 }
 0x571   : > { %1376 = vmatpush.msrb.mxu1 %v2084_v11 }
 0x572   : > { %1430 = vmatpush.msra.mxu3 %v2101_v39 }
 0x573   : > { %1377 = vmatpush.msrb.mxu1 %v2083_v12 }
 0x574   : > { %1431 = vmatpush.msra.mxu3 %v2100_v40 }
 0x575   : > { %1378 = vmatpush.msrb.mxu1 %v2082_v13 }
 0x576   : > { %1432 = vmatpush.msra.mxu3 %v2099_v41 }
 0x578   : > { %1433 = vmatpush.msra.mxu3 %v2098_v42 }
 0x5c1   : > { %v1273_v21 = vpop.permute.xlu1 %1272  ;;  %v1259_v22 = vpop.permute.xlu0 %1258 }
 0x5c2   : > { %vm1277_vm1 = vcmp.eq.s32.totalorder %v3150_v20, %v1273_v21  ;;  %vm1263_vm2 = vcmp.eq.s32.totalorder %v3150_v20, %v1259_v22 }
 0x5c3   : > { %v2076_v24 = vsel %vm1277_vm1, 1.0, %v2743_v23  ;;  %v2074_v25 = vsel %vm1263_vm2, 1.0, %v2743_v23 }
 0x5c4   : > { %2078 = vmatmul.msk.f32.vlgmr.msra.gmra.mxu0 %vm1287_vm0, %v2076_v24  ;;  %2080 = vmatmul.msk.f32.vlgmr.msra.gmra.mxu1 %vm1287_vm0, %v2074_v25  ;;  %v2453_v25 = vld [vmem:[%s3037_s21 + $0x2] ss:$0 sm:$0xff] }
 0x5c9   : > { %v1276_v26 = vpop.permute.xlu1 %1275 }
 0x5ca   : > { %v1262_v27 = vpop.permute.xlu0 %1261  ;;  %vm1278_vm3 = vcmp.eq.s32.totalorder %v3150_v20, %v1276_v26 }
 0x5cb   : > { %vm1264_vm4 = vcmp.eq.s32.totalorder %v3150_v20, %v1262_v27  ;;  %v2077_v28 = vsel %vm1278_vm3, 1.0, %v2743_v23 }
 0x5cc   : > { %v2075_v29 = vsel %vm1264_vm4, 1.0, %v2743_v23  ;;  %2079 = vmatmul.msk.f32.gmra.mxu0 %vm1287_vm0, %v2077_v28 }
 0x5cd   : > { %2081 = vmatmul.msk.f32.gmra.mxu1 %vm1287_vm0, %v2075_v29  ;;  %v2454_v29 = vld [vmem:[%s3037_s21 + $0x3] ss:$0 sm:$0xff] }
 0x5d5   : > { %1379 = vmatmul.f32.vlgmr.msrb.gmra.mxu1 %v3161_v30 }
 0x5f2   : > { %v1383_v52 = vpop.f32.mrf.mxu2 }
 0x641   : > { %v1340_v43 = vpop.f32.mrf.mxu1  ;;  %v1311_v44 = vpop.f32.mrf.mxu0 }
 0x642   : > { %v1341_v47 = vadd.f32 %v1340_v43, %v1311_v44  ;;  %v1502_v44 = vld [vmem:[#allocation4 + $0x8] sm:$0xff] }
 0x649   : > { %v1314_v46 = vpop.f32.mrf.mxu0 }
 0x64a   : > { %v1343_v45 = vpop.f32.mrf.mxu1 }
 0x64b   : > { %v1344_v49 = vadd.f32 %v1343_v45, %v1314_v46  ;;  %v1503_v46 = vld [vmem:[#allocation4] sm:$0xff] }
 0x64d   : > { %v1387_v54 = vadd.f32 %v1383_v52, %v1344_v49 }
 0x64f   : > { %v1393_v56 = vadd.f32 %v2451_v51, %v1387_v54 }
 0x651   : > { %v1395_v57 = vmax.f32 %v1393_v56, 0.0 }
 0x652   : > { %v1380_v48 = vpop.f32.mrf.mxu1 }
 0x653   : > { %v1386_v50 = vadd.f32 %v1380_v48, %v1341_v47 }
 0x655   : > { %v1392_v53 = vadd.f32 %v2451_v51, %v1386_v50 }
 0x657   : > { %v1394_v55 = vmax.f32 %v1392_v53, 0.0 }
 0x659   : > { %1434 = vmatmul.f32.vlgmr.msra.gmra.mxu3 %v1394_v55 }
 0x661   : > { %1437 = vmatmul.f32.gmra.mxu3 %v1395_v57 }
 0x6dc   : > { %v1435_v58 = vpop.f32.mrf.mxu3 }
 0x6dd   : > { %v1436_v62 = vadd.f32 %v2452_v59, %v1435_v58 }
 0x6e4   : > { %v1438_v60 = vpop.f32.mrf.mxu3 }
 0x6e5   : > { %v1439_v61 = vadd.f32 %v2452_v59, %v1438_v60 }
 0x6e7   : > { %1447 = vadd.xlane.f32.xlu2 %v1439_v61 }
 0x6ef   : > { %1445 = vadd.xlane.f32.xlu2 %v1436_v62 }
 0x718   : > { %1504 = vxpose.xlu2.b32.start [1/2] (short) (narrow) %v2076_v24, 16 }
 0x720   : > { %1505 = vxpose.xlu2.b32.end [2/2] (short) (narrow) %v2077_v28, 16 }
 0x75a   : > { %v1448_v63 = vpop.xlane.xlu2 %1447 }
 0x75b   : > { %v1450_v0 = vmul.f32 0.03125, %v1448_v63 }
 0x75d   : > { %v1453_v1 = vsub.f32 %v1439_v61, %v1450_v0 }
 0x75f   : > { %v1455_v2 = vsel %vm1451_vm5, %v1453_v1, 0.0 }
 0x760   : > { %v1457_v3 = vmul.f32 %v1455_v2, %v1455_v2 }
 0x762   : > { %1460 = vadd.xlane.f32.xlu0 %v1457_v3  ;;  %v1446_v4 = vpop.xlane.xlu2 %1445 }
 0x763   : > { %v1449_v5 = vmul.f32 0.03125, %v1446_v4 }
 0x765   : > { %v1452_v6 = vsub.f32 %v1436_v62, %v1449_v5 }
 0x767   : > { %v1454_v7 = vsel %vm1451_vm5, %v1452_v6, 0.0 }
 0x768   : > { %v1456_v8 = vmul.f32 %v1454_v7, %v1454_v7 }
 0x76a   : > { %1458 = vadd.xlane.f32.xlu1 %v1456_v8 }
 0x7b1   : > { %v1520_v41 = vpop.trf.xlu2 }
 0x7b9   : > { %v1521_v43 = vpop.trf.xlu2 }
 0x7d5   : > { %v1461_v9 = vpop.xlane.xlu0 %1460 }
 0x7d6   : > { %v1463_v10 = vmul.f32 0.03125, %v1461_v9 }
 0x7d8   : > { %v1465_v11 = vadd.f32 1e-05, %v1463_v10 }
 0x7da   : > { %2455 = vrsqrt.f32 %v1465_v11  ;;  %vm1482_vm7 = vweird.f32 %v1465_v11 }
 0x7dd   : > { %v1459_v12 = vpop.xlane.xlu1 %1458 }
 0x7de   : > { %v1462_v13 = vmul.f32 0.03125, %v1459_v12 }
 0x7e0   : > { %v2456_v15 = vpop.eup %2455  ;;  %v1464_v16 = vadd.f32 1e-05, %v1462_v13 }
 0x7e1   : > { %v1477_v17 = vmul.f32 %v2456_v15, %v1465_v11  ;;  %vm1483_vm6 = vweird.f32 %v2456_v15 }
 0x7e2   : > { %2457 = vrsqrt.f32 %v1464_v16  ;;  %vm1484_vm8 = vmor %vm1482_vm7, %vm1483_vm6  ;;  %vm1472_vm10 = vweird.f32 %v1464_v16 }
 0x7e3   : > { %v1478_v18 = vmul.f32 %v2456_v15, %v1477_v17 }
 0x7e5   : > { %v1479_v19 = vmul.f32 0.5, %v1478_v18 }
 0x7e7   : > { %v1480_v21 = vsub.f32 1.5, %v1479_v19 }
 0x7e8   : > { %v2458_v22 = vpop.eup %2457 }
 0x7e9   : > { %v1481_v23 = vmul.f32 %v2456_v15, %v1480_v21  ;;  %v1467_v24 = vmul.f32 %v2458_v22, %v1464_v16  ;;  %vm1473_vm9 = vweird.f32 %v2458_v22 }
 0x7ea   : > { %vm1474_vm11 = vmor %vm1472_vm10, %vm1473_vm9 }
 0x7eb   : > { %v1485_v26 = vsel %vm1484_vm8, %v2456_v15, %v1481_v23  ;;  %v1468_v27 = vmul.f32 %v2458_v22, %v1467_v24 }
 0x7ec   : > { %v1487_v28 = vmul.f32 %v1485_v26, %v1453_v1 }
 0x7ed   : > { %v1469_v31 = vmul.f32 0.5, %v1468_v27 }
 0x7ee   : > { %v1492_v32 = vmul.f32 %v2453_v25, %v1487_v28 }
 0x7ef   : > { %v1470_v33 = vsub.f32 1.5, %v1469_v31 }
 0x7f0   : > { %v1497_v34 = vadd.f32 %v2454_v29, %v1492_v32 }
 0x7f1   : > { %v1471_v35 = vmul.f32 %v2458_v22, %v1470_v33 }
 0x7f2   : > { %v1499_v36 = vadd.f32 %v1497_v34, %v3143_v14 }
 0x7f3   : > { %v1475_v37 = vsel %vm1474_vm11, %v2458_v22, %v1471_v35 }
 0x7f4   : > { %1501 = vst [vmem:[%s3140_s2 + $0x8] sm:$0xff] %v1499_v36  ;;  %1556 = vmatpush.msrb.mxu0 %v1499_v36  ;;  %v1486_v38 = vmul.f32 %v1475_v37, %v1452_v6 }
 0x7f6   : > { %v1491_v39 = vmul.f32 %v2453_v25, %v1486_v38 }
 0x7f8   : > { %v1496_v40 = vadd.f32 %v2454_v29, %v1491_v39 }
 0x7fa   : > { %v1498_v42 = vadd.f32 %v1496_v40, %v3161_v30 }
 0x7fc   : > { %1500 = vst [vmem:[%s3140_s2] sm:$0xff] %v1498_v42  ;;  %1557 = vmatpush.msrb.mxu0 %v1498_v42 }
 0x7fd   : > { %2117 = vmatmul.msk.f32.vlgmr.msrb.gmra.mxu0 %vm1287_vm0, %v1520_v41 }
 0x805   : > { %2118 = vmatmul.msk.f32.gmra.mxu0 %vm1287_vm0, %v1521_v43 }
 0x87a   : > { %v1559_v45 = vpop.f32.mrf.mxu0 }
 0x87b   : > { %v1565_v14 = vadd.f32 %v1559_v45, %v1502_v44 }
 0x87d   : > { %1567 = vst [vmem:[#allocation4 + $0x8] sm:$0xff] %v1565_v14 }
 0x881   : > { %1572 = sbr.rel (%p2119_p11) target bundleno = 2759 (0xac7), region = 144 }
 0x882   : > { %v1562_v47 = vpop.f32.mrf.mxu0 }
 0x883   : > { %v1566_v48 = vadd.f32 %v1562_v47, %v1503_v46 }
 0x885   : > { %1568 = vst [vmem:[#allocation4] sm:$0xff] %v1566_v48 }
 0x886   : > { %v2151_v30 = vld [vmem:[%s2995_s1 + $0x2f8] sm:$0xff]  ;;  %v2150_v50 = vld [vmem:[%s2995_s1 + $0x2f0] sm:$0xff]  ;;  %v2149_v52 = vld [vmem:[%s2995_s1 + $0x2e8] sm:$0xff] }
 0x887   : > { %v2135_v49 = vld [vmem:[%s2995_s1 + $0x278] sm:$0xff]  ;;  %1611 = vmatpush.msra.mxu0 %v2151_v30  ;;  %v2134_v51 = vld [vmem:[%s2995_s1 + $0x270] sm:$0xff]  ;;  %2256 = vmatpush.msra.mxu3 %v2151_v30  ;;  %v2133_v53 = vld [vmem:[%s2995_s1 + $0x268] sm:$0xff] }
 0x888   : > { %1634 = vmatpush.msra.mxu1 %v2135_v49  ;;  %v2148_v54 = vld [vmem:[%s2995_s1 + $0x2e0] sm:$0xff]  ;;  %v2147_v56 = vld [vmem:[%s2995_s1 + $0x2d8] sm:$0xff]  ;;  %v2146_v58 = vld [vmem:[%s2995_s1 + $0x2d0] sm:$0xff] }
 0x889   : > { %1612 = vmatpush.msra.mxu0 %v2150_v50  ;;  %2257 = vmatpush.msra.mxu3 %v2150_v50  ;;  %v2132_v55 = vld [vmem:[%s2995_s1 + $0x260] sm:$0xff]  ;;  %v2131_v57 = vld [vmem:[%s2995_s1 + $0x258] sm:$0xff]  ;;  %v2130_v59 = vld [vmem:[%s2995_s1 + $0x250] sm:$0xff] }
 0x88a   : > { %1635 = vmatpush.msra.mxu1 %v2134_v51  ;;  %v2145_v60 = vld [vmem:[%s2995_s1 + $0x2c8] sm:$0xff]  ;;  %v2144_v62 = vld [vmem:[%s2995_s1 + $0x2c0] sm:$0xff]  ;;  %v2168_v0 = vld [vmem:[%s2995_s1 + $0x378] sm:$0xff] }
 0x88b   : > { %1613 = vmatpush.msra.mxu0 %v2149_v52  ;;  %2258 = vmatpush.msra.mxu3 %v2149_v52  ;;  %v2129_v61 = vld [vmem:[%s2995_s1 + $0x248] sm:$0xff]  ;;  %v2128_v63 = vld [vmem:[%s2995_s1 + $0x240] sm:$0xff]  ;;  %v2167_v1 = vld [vmem:[%s2995_s1 + $0x370] sm:$0xff] }
 0x88c   : > { %1636 = vmatpush.msra.mxu1 %v2133_v53  ;;  %v2143_v2 = vld [vmem:[%s2995_s1 + $0x2b8] sm:$0xff]  ;;  %1688 = vmatpush.msra.mxu2 %v2168_v0  ;;  %v2142_v4 = vld [vmem:[%s2995_s1 + $0x2b0] sm:$0xff]  ;;  %v2166_v6 = vld [vmem:[%s2995_s1 + $0x368] sm:$0xff] }
 0x88d   : > { %1614 = vmatpush.msra.mxu0 %v2148_v54  ;;  %2259 = vmatpush.msra.mxu3 %v2148_v54  ;;  %v2127_v3 = vld [vmem:[%s2995_s1 + $0x238] sm:$0xff]  ;;  %v2126_v5 = vld [vmem:[%s2995_s1 + $0x230] sm:$0xff]  ;;  %v2165_v7 = vld [vmem:[%s2995_s1 + $0x360] sm:$0xff] }
 0x88e   : > { %1637 = vmatpush.msra.mxu1 %v2132_v55  ;;  %1689 = vmatpush.msra.mxu2 %v2167_v1  ;;  %v2141_v8 = vld [vmem:[%s2995_s1 + $0x2a8] sm:$0xff]  ;;  %v2164_v10 = vld [vmem:[%s2995_s1 + $0x358] sm:$0xff]  ;;  %v2140_v11 = vld [vmem:[%s2995_s1 + $0x2a0] sm:$0xff] }
 0x88f   : > { %1615 = vmatpush.msra.mxu0 %v2147_v56  ;;  %2260 = vmatpush.msra.mxu3 %v2147_v56  ;;  %v2125_v9 = vld [vmem:[%s2995_s1 + $0x228] sm:$0xff]  ;;  %v2124_v12 = vld [vmem:[%s2995_s1 + $0x220] sm:$0xff]  ;;  %v2163_v13 = vld [vmem:[%s2995_s1 + $0x350] sm:$0xff] }
 0x890   : > { %1638 = vmatpush.msra.mxu1 %v2131_v57  ;;  %1690 = vmatpush.msra.mxu2 %v2166_v6  ;;  %v2139_v15 = vld [vmem:[%s2995_s1 + $0x298] sm:$0xff]  ;;  %v2162_v17 = vld [vmem:[%s2995_s1 + $0x348] sm:$0xff]  ;;  %v2138_v18 = vld [vmem:[%s2995_s1 + $0x290] sm:$0xff] }
 0x891   : > { %1616 = vmatpush.msra.mxu0 %v2146_v58  ;;  %2261 = vmatpush.msra.mxu3 %v2146_v58  ;;  %v2123_v16 = vld [vmem:[%s2995_s1 + $0x218] sm:$0xff]  ;;  %v2122_v19 = vld [vmem:[%s2995_s1 + $0x210] sm:$0xff]  ;;  %v2161_v21 = vld [vmem:[%s2995_s1 + $0x340] sm:$0xff] }
 0x892   : > { %1639 = vmatpush.msra.mxu1 %v2130_v59  ;;  %1691 = vmatpush.msra.mxu2 %v2165_v7  ;;  %v2137_v22 = vld [vmem:[%s2995_s1 + $0x288] sm:$0xff]  ;;  %v2160_v24 = vld [vmem:[%s2995_s1 + $0x338] sm:$0xff]  ;;  %v2136_v25 = vld [vmem:[%s2995_s1 + $0x280] sm:$0xff] }
 0x893   : > { %1617 = vmatpush.msra.mxu0 %v2145_v60  ;;  %2262 = vmatpush.msra.mxu3 %v2145_v60  ;;  %v2121_v23 = vld [vmem:[%s2995_s1 + $0x208] sm:$0xff]  ;;  %v2120_v26 = vld [vmem:[%s2995_s1 + $0x200] sm:$0xff]  ;;  %v1592_v27 = vld [vmem:[#allocation4 + $0x8] sm:$0xff] }
 0x894   : > { %1640 = vmatpush.msra.mxu1 %v2129_v61  ;;  %1692 = vmatpush.msra.mxu2 %v2164_v10  ;;  %v3234_v28 = vld [vmem:[#allocation2] sm:$0xff]  ;;  %v2159_v29 = vld [vmem:[%s2995_s1 + $0x330] sm:$0xff]  ;;  %v2158_v32 = vld [vmem:[%s2995_s1 + $0x328] sm:$0xff] }
 0x895   : > { %1618 = vmatpush.msra.mxu0 %v2144_v62  ;;  %2263 = vmatpush.msra.mxu3 %v2144_v62  ;;  %v1593_v31 = vld [vmem:[#allocation4] sm:$0xff]  ;;  %v2157_v33 = vld [vmem:[%s2995_s1 + $0x320] sm:$0xff]  ;;  %v3240_v34 = vld [vmem:[#allocation2 + $0x8] sm:$0xff] }
 0x896   : > { %1641 = vmatpush.msra.mxu1 %v2128_v63  ;;  %1693 = vmatpush.msra.mxu2 %v2163_v13  ;;  %v2156_v35 = vld [vmem:[%s2995_s1 + $0x318] sm:$0xff]  ;;  %v2155_v36 = vld [vmem:[%s2995_s1 + $0x310] sm:$0xff]  ;;  %v2154_v37 = vld [vmem:[%s2995_s1 + $0x308] sm:$0xff] }
 0x897   : > { %1619 = vmatpush.msra.mxu0 %v2143_v2  ;;  %2264 = vmatpush.msra.mxu3 %v2143_v2  ;;  %v2153_v38 = vld [vmem:[%s2995_s1 + $0x300] sm:$0xff] }
 0x898   : > { %1642 = vmatpush.msra.mxu1 %v2127_v3  ;;  %1694 = vmatpush.msra.mxu2 %v2162_v17  ;;  %v2459_v39 = vld [vmem:[%s3037_s21 + $0x4] ss:$0 sm:$0xff]  ;;  %v2460_v30 = vld [vmem:[%s3037_s21 + $0x5] ss:$0 sm:$0xff] }
 0x899   : > { %1620 = vmatpush.msra.mxu0 %v2142_v4  ;;  %2265 = vmatpush.msra.mxu3 %v2142_v4 }
 0x89a   : > { %1643 = vmatpush.msra.mxu1 %v2126_v5  ;;  %1695 = vmatpush.msra.mxu2 %v2161_v21 }
 0x89b   : > { %1621 = vmatpush.msra.mxu0 %v2141_v8  ;;  %2266 = vmatpush.msra.mxu3 %v2141_v8 }
 0x89c   : > { %1644 = vmatpush.msra.mxu1 %v2125_v9  ;;  %1696 = vmatpush.msra.mxu2 %v2160_v24 }
 0x89d   : > { %1622 = vmatpush.msra.mxu0 %v2140_v11  ;;  %2267 = vmatpush.msra.mxu3 %v2140_v11 }
 0x89e   : > { %1645 = vmatpush.msra.mxu1 %v2124_v12  ;;  %1697 = vmatpush.msra.mxu2 %v2159_v29  ;;  %v2461_v12 = vld [vmem:[%s3037_s21 + $0x6] ss:$0 sm:$0xff] }
 0x89f   : > { %1623 = vmatpush.msra.mxu0 %v2139_v15  ;;  %2268 = vmatpush.msra.mxu3 %v2139_v15 }
 0x8a0   : > { %1646 = vmatpush.msra.mxu1 %v2123_v16  ;;  %1698 = vmatpush.msra.mxu2 %v2158_v32  ;;  %v2462_v16 = vld [vmem:[%s3037_s21 + $0x7] ss:$0 sm:$0xff] }
 0x8a1   : > { %1624 = vmatpush.msra.mxu0 %v2138_v18  ;;  %2269 = vmatpush.msra.mxu3 %v2138_v18 }
 0x8a2   : > { %1647 = vmatpush.msra.mxu1 %v2122_v19  ;;  %1699 = vmatpush.msra.mxu2 %v2157_v33 }
 0x8a3   : > { %1625 = vmatpush.msra.mxu0 %v2137_v22  ;;  %2270 = vmatpush.msra.mxu3 %v2137_v22 }
 0x8a4   : > { %1648 = vmatpush.msra.mxu1 %v2121_v23  ;;  %1700 = vmatpush.msra.mxu2 %v2156_v35 }
 0x8a5   : > { %1626 = vmatpush.msra.mxu0 %v2136_v25  ;;  %2271 = vmatpush.msra.mxu3 %v2136_v25 }
 0x8a6   : > { %1649 = vmatpush.msra.mxu1 %v2120_v26  ;;  %1627 = vmatmul.f32.vlgmr.msra.gmra.mxu0 %v1592_v27 }
 0x8a7   : > { %1650 = vmatmul.f32.vlgmr.msra.gmra.mxu1 %v3234_v28  ;;  %1630 = vmatmul.f32.vlgmr.msra.gmra.mxu3 %v1593_v31 }
 0x8a8   : > { %1701 = vmatpush.msra.mxu2 %v2155_v36 }
 0x8aa   : > { %1702 = vmatpush.msra.mxu2 %v2154_v37 }
 0x8ac   : > { %1703 = vmatpush.msra.mxu2 %v2153_v38 }
 0x8af   : > { %1653 = vmatmul.f32.gmra.mxu1 %v3240_v34 }
 0x923   : > { %v1628_v40 = vpop.f32.mrf.mxu0 }
 0x924   : > { %v1651_v41 = vpop.f32.mrf.mxu1 }
 0x925   : > { %v1652_v42 = vadd.f32 %v1651_v41, %v1628_v40 }
 0x927   : > { %v1662_v43 = vadd.f32 %v2459_v39, %v1652_v42 }
 0x929   : > { %v1664_v44 = vmax.f32 %v1662_v43, 0.0 }
 0x92a   : > { %v1631_v45 = vpop.f32.mrf.mxu3 }
 0x92b   : > { %1704 = vmatmul.f32.vlgmr.msra.gmra.mxu2 %v1664_v44 }
 0x92c   : > { %v1654_v14 = vpop.f32.mrf.mxu1 }
 0x92d   : > { %v1655_v46 = vadd.f32 %v1654_v14, %v1631_v45 }
 0x92f   : > { %v1663_v47 = vadd.f32 %v2459_v39, %v1655_v46 }
 0x931   : > { %v1665_v48 = vmax.f32 %v1663_v47, 0.0 }
 0x933   : > { %1707 = vmatmul.f32.gmra.mxu2 %v1665_v48 }
 0x9ae   : > { %v1705_v49 = vpop.f32.mrf.mxu2 }
 0x9af   : > { %v1706_v50 = vadd.f32 %v2460_v30, %v1705_v49 }
 0x9b1   : > { %1715 = vadd.xlane.f32.xlu0 %v1706_v50 }
 0x9b6   : > { %v1708_v51 = vpop.f32.mrf.mxu2 }
 0x9b7   : > { %v1709_v52 = vadd.f32 %v2460_v30, %v1708_v51 }
 0x9b9   : > { %1717 = vadd.xlane.f32.xlu0 %v1709_v52 }
 0xa24   : > { %v1716_v53 = vpop.xlane.xlu0 %1715 }
 0xa25   : > { %v1719_v54 = vmul.f32 0.03125, %v1716_v53 }
 0xa27   : > { %v1721_v55 = vsub.f32 %v1706_v50, %v1719_v54 }
 0xa29   : > { %v1723_v56 = vsel %vm1451_vm5, %v1721_v55, 0.0 }
 0xa2a   : > { %v1725_v57 = vmul.f32 %v1723_v56, %v1723_v56 }
 0xa2c   : > { %1727 = vadd.xlane.f32.xlu1 %v1725_v57  ;;  %v1718_v58 = vpop.xlane.xlu0 %1717 }
 0xa2d   : > { %v1720_v59 = vmul.f32 0.03125, %v1718_v58 }
 0xa2f   : > { %v1722_v60 = vsub.f32 %v1709_v52, %v1720_v59 }
 0xa31   : > { %v1724_v61 = vsel %vm1451_vm5, %v1722_v60, 0.0 }
 0xa32   : > { %v1726_v62 = vmul.f32 %v1724_v61, %v1724_v61 }
 0xa34   : > { %1729 = vadd.xlane.f32.xlu1 %v1726_v62 }
 0xa9f   : > { %v1728_v63 = vpop.xlane.xlu1 %1727 }
 0xaa0   : > { %v1731_v0 = vmul.f32 0.03125, %v1728_v63 }
 0xaa2   : > { %v1733_v1 = vadd.f32 1e-05, %v1731_v0 }
 0xaa4   : > { %2463 = vrsqrt.f32 %v1733_v1  ;;  %vm1741_vm13 = vweird.f32 %v1733_v1 }
 0xaa7   : > { %v1730_v2 = vpop.xlane.xlu1 %1729 }
 0xaa8   : > { %v1732_v3 = vmul.f32 0.03125, %v1730_v2 }
 0xaaa   : > { %v2464_v4 = vpop.eup %2463  ;;  %v1734_v5 = vadd.f32 1e-05, %v1732_v3 }
 0xaab   : > { %v1736_v6 = vmul.f32 %v2464_v4, %v1733_v1  ;;  %vm1742_vm12 = vweird.f32 %v2464_v4 }
 0xaac   : > { %2465 = vrsqrt.f32 %v1734_v5  ;;  %vm1743_vm14 = vmor %vm1741_vm13, %vm1742_vm12  ;;  %vm1751_vm0 = vweird.f32 %v1734_v5 }
 0xaad   : > { %v1737_v7 = vmul.f32 %v2464_v4, %v1736_v6 }
 0xaaf   : > { %v1738_v8 = vmul.f32 0.5, %v1737_v7 }
 0xab1   : > { %v1739_v9 = vsub.f32 1.5, %v1738_v8 }
 0xab2   : > { %v2466_v20 = vpop.eup %2465 }
 0xab3   : > { %v1740_v10 = vmul.f32 %v2464_v4, %v1739_v9  ;;  %v1746_v11 = vmul.f32 %v2466_v20, %v1734_v5  ;;  %vm1752_vm15 = vweird.f32 %v2466_v20 }
 0xab4   : > { %vm1753_vm1 = vmor %vm1751_vm0, %vm1752_vm15 }
 0xab5   : > { %v1744_v13 = vsel %vm1743_vm14, %v2464_v4, %v1740_v10  ;;  %v1747_v15 = vmul.f32 %v2466_v20, %v1746_v11 }
 0xab6   : > { %v1755_v17 = vmul.f32 %v1744_v13, %v1721_v55 }
 0xab7   : > { %v1748_v18 = vmul.f32 0.5, %v1747_v15 }
 0xab8   : > { %v1760_v19 = vmul.f32 %v2461_v12, %v1755_v17 }
 0xab9   : > { %v1749_v21 = vsub.f32 1.5, %v1748_v18 }
 0xaba   : > { %v1765_v22 = vadd.f32 %v2462_v16, %v1760_v19 }
 0xabb   : > { %v1750_v23 = vmul.f32 %v2466_v20, %v1749_v21 }
 0xabc   : > { %v1767_v24 = vadd.f32 %v1765_v22, %v3234_v28 }
 0xabd   : > { %v1754_v25 = vsel %vm1753_vm1, %v2466_v20, %v1750_v23 }
 0xabe   : > { %1769 = vst [vmem:[#allocation2] sm:$0xff] %v1767_v24  ;;  %v1756_v26 = vmul.f32 %v1754_v25, %v1722_v60 }
 0xac0   : > { %v1761_v27 = vmul.f32 %v2461_v12, %v1756_v26 }
 0xac2   : > { %v1766_v29 = vadd.f32 %v2462_v16, %v1761_v27 }
 0xac4   : > { %v1768_v31 = vadd.f32 %v1766_v29, %v3240_v34 }
 0xac6   : > { %1770 = vst [vmem:[#allocation2 + $0x8] sm:$0xff] %v1768_v31 }
 0xac7 PF: > { %p1771_p12 = scmp.eq.s32.totalorder %s2721_s4, 1 }
 0xac9   : > { %p1772_p13 = pnand %p1771_p12, %p1569_p10 }
 0xaca   : > { %s3365_s1 = sld [smem:[#allocation41_spill]] (!%p1772_p13) }
 0xacb   : > { %1775 = sbr.rel (%p1772_p13) target bundleno = 3071 (0xbff), region = 148  ;;  %s3366_s11 = sld [smem:[#allocation43_spill]] (!%p1772_p13) }
 0xad0   : > { %v1793_v32 = vld [vmem:[#allocation13 + $0x78] sm:$0xff]  ;;  %v1792_v33 = vld [vmem:[#allocation13 + $0x70] sm:$0xff]  ;;  %v1791_v28 = vld [vmem:[#allocation13 + $0x68] sm:$0xff] }
 0xad1   : > { %2272 = vmatpush.msra.mxu2 %v1793_v32  ;;  %1798 = vmatpush.msra.mxu0 %v1793_v32  ;;  %v1790_v35 = vld [vmem:[#allocation13 + $0x60] sm:$0xff]  ;;  %v1789_v36 = vld [vmem:[#allocation13 + $0x58] sm:$0xff]  ;;  %v1837_v37 = vld [vmem:[#allocation14 + $0x70] sm:$0xff] }
 0xad2   : > { %v1838_v34 = vld [vmem:[#allocation14 + $0x78] sm:$0xff]  ;;  %v1788_v38 = vld [vmem:[#allocation13 + $0x50] sm:$0xff]  ;;  %v1836_v39 = vld [vmem:[#allocation14 + $0x68] sm:$0xff] }
 0xad3   : > { %2273 = vmatpush.msra.mxu2 %v1792_v33  ;;  %1799 = vmatpush.msra.mxu0 %v1792_v33  ;;  %v1787_v40 = vld [vmem:[#allocation13 + $0x48] sm:$0xff]  ;;  %v1835_v41 = vld [vmem:[#allocation14 + $0x60] sm:$0xff]  ;;  %v1834_v43 = vld [vmem:[#allocation14 + $0x58] sm:$0xff] }
 0xad4   : > { %2288 = vmatpush.msra.mxu3 %v1838_v34  ;;  %1843 = vmatpush.msra.mxu1 %v1838_v34  ;;  %v1786_v42 = vld [vmem:[#allocation13 + $0x40] sm:$0xff]  ;;  %v1785_v44 = vld [vmem:[#allocation13 + $0x38] sm:$0xff]  ;;  %v1833_v45 = vld [vmem:[#allocation14 + $0x50] sm:$0xff] }
 0xad5   : > { %2274 = vmatpush.msra.mxu2 %v1791_v28  ;;  %1800 = vmatpush.msra.mxu0 %v1791_v28  ;;  %v1784_v14 = vld [vmem:[#allocation13 + $0x30] sm:$0xff]  ;;  %v1832_v46 = vld [vmem:[#allocation14 + $0x48] sm:$0xff]  ;;  %v1831_v48 = vld [vmem:[#allocation14 + $0x40] sm:$0xff] }
 0xad6   : > { %2289 = vmatpush.msra.mxu3 %v1837_v37  ;;  %1844 = vmatpush.msra.mxu1 %v1837_v37  ;;  %v1783_v47 = vld [vmem:[#allocation13 + $0x28] sm:$0xff]  ;;  %v1782_v30 = vld [vmem:[#allocation13 + $0x20] sm:$0xff]  ;;  %v1830_v49 = vld [vmem:[#allocation14 + $0x38] sm:$0xff] }
 0xad7   : > { %2275 = vmatpush.msra.mxu2 %v1790_v35  ;;  %1801 = vmatpush.msra.mxu0 %v1790_v35  ;;  %v1781_v50 = vld [vmem:[#allocation13 + $0x18] sm:$0xff]  ;;  %v1829_v51 = vld [vmem:[#allocation14 + $0x30] sm:$0xff]  ;;  %v1828_v53 = vld [vmem:[#allocation14 + $0x28] sm:$0xff] }
 0xad8   : > { %2290 = vmatpush.msra.mxu3 %v1836_v39  ;;  %1845 = vmatpush.msra.mxu1 %v1836_v39  ;;  %v1780_v52 = vld [vmem:[#allocation13 + $0x10] sm:$0xff]  ;;  %v1779_v54 = vld [vmem:[#allocation13 + $0x8] sm:$0xff]  ;;  %v1827_v55 = vld [vmem:[#allocation14 + $0x20] sm:$0xff] }
 0xad9   : > { %2276 = vmatpush.msra.mxu2 %v1789_v36  ;;  %1802 = vmatpush.msra.mxu0 %v1789_v36  ;;  %v1778_v56 = vld [vmem:[#allocation13] sm:$0xff]  ;;  %v1777_v57 = vld [vmem:[#allocation2 + $0x8] sm:$0xff]  ;;  %v1826_v59 = vld [vmem:[#allocation14 + $0x18] sm:$0xff] }
 0xada   : > { %2291 = vmatpush.msra.mxu3 %v1835_v41  ;;  %1846 = vmatpush.msra.mxu1 %v1835_v41  ;;  %v1776_v58 = vld [vmem:[#allocation2] sm:$0xff]  ;;  %v1825_v60 = vld [vmem:[#allocation14 + $0x10] sm:$0xff]  ;;  %v1824_v61 = vld [vmem:[#allocation14 + $0x8] sm:$0xff] }
 0xadb   : > { %2277 = vmatpush.msra.mxu2 %v1788_v38  ;;  %1803 = vmatpush.msra.mxu0 %v1788_v38  ;;  %v1823_v62 = vld [vmem:[#allocation14] sm:$0xff] }
 0xadc   : > { %2292 = vmatpush.msra.mxu3 %v1834_v43  ;;  %1847 = vmatpush.msra.mxu1 %v1834_v43  ;;  %v2467_v63 = vld [vmem:[%s3365_s1] ss:$0 sm:$0xff] }
 0xadd   : > { %2278 = vmatpush.msra.mxu2 %v1787_v40  ;;  %1804 = vmatpush.msra.mxu0 %v1787_v40  ;;  %v2468_v6 = vld [vmem:[%s3366_s11] ss:$0 sm:$0xff] }
 0xade   : > { %2293 = vmatpush.msra.mxu3 %v1833_v45  ;;  %1848 = vmatpush.msra.mxu1 %v1833_v45 }
 0xadf   : > { %2279 = vmatpush.msra.mxu2 %v1786_v42  ;;  %1805 = vmatpush.msra.mxu0 %v1786_v42 }
 0xae0   : > { %2294 = vmatpush.msra.mxu3 %v1832_v46  ;;  %1849 = vmatpush.msra.mxu1 %v1832_v46 }
 0xae1   : > { %2280 = vmatpush.msra.mxu2 %v1785_v44  ;;  %1806 = vmatpush.msra.mxu0 %v1785_v44 }
 0xae2   : > { %2295 = vmatpush.msra.mxu3 %v1831_v48  ;;  %1850 = vmatpush.msra.mxu1 %v1831_v48 }
 0xae3   : > { %2281 = vmatpush.msra.mxu2 %v1784_v14  ;;  %1807 = vmatpush.msra.mxu0 %v1784_v14 }
 0xae4   : > { %2296 = vmatpush.msra.mxu3 %v1830_v49  ;;  %1851 = vmatpush.msra.mxu1 %v1830_v49 }
 0xae5   : > { %2282 = vmatpush.msra.mxu2 %v1783_v47  ;;  %1808 = vmatpush.msra.mxu0 %v1783_v47 }
 0xae6   : > { %2297 = vmatpush.msra.mxu3 %v1829_v51  ;;  %1852 = vmatpush.msra.mxu1 %v1829_v51 }
 0xae7   : > { %2283 = vmatpush.msra.mxu2 %v1782_v30  ;;  %1809 = vmatpush.msra.mxu0 %v1782_v30 }
 0xae8   : > { %2298 = vmatpush.msra.mxu3 %v1828_v53  ;;  %1853 = vmatpush.msra.mxu1 %v1828_v53 }
 0xae9   : > { %2284 = vmatpush.msra.mxu2 %v1781_v50  ;;  %1810 = vmatpush.msra.mxu0 %v1781_v50 }
 0xaea   : > { %2299 = vmatpush.msra.mxu3 %v1827_v55  ;;  %1854 = vmatpush.msra.mxu1 %v1827_v55 }
 0xaeb   : > { %2285 = vmatpush.msra.mxu2 %v1780_v52  ;;  %1811 = vmatpush.msra.mxu0 %v1780_v52 }
 0xaec   : > { %2300 = vmatpush.msra.mxu3 %v1826_v59  ;;  %1855 = vmatpush.msra.mxu1 %v1826_v59 }
 0xaed   : > { %2286 = vmatpush.msra.mxu2 %v1779_v54  ;;  %1812 = vmatpush.msra.mxu0 %v1779_v54 }
 0xaee   : > { %2301 = vmatpush.msra.mxu3 %v1825_v60  ;;  %1856 = vmatpush.msra.mxu1 %v1825_v60 }
 0xaef   : > { %2287 = vmatpush.msra.mxu2 %v1778_v56  ;;  %1813 = vmatpush.msra.mxu0 %v1778_v56 }
 0xaf0   : > { %1817 = vmatmul.f32.vlgmr.msra.gmra.mxu2 %v1777_v57  ;;  %1814 = vmatmul.f32.vlgmr.msra.gmra.mxu0 %v1776_v58 }
 0xaf1   : > { %2302 = vmatpush.msra.mxu3 %v1824_v61  ;;  %1857 = vmatpush.msra.mxu1 %v1824_v61 }
 0xaf3   : > { %2303 = vmatpush.msra.mxu3 %v1823_v62  ;;  %1858 = vmatpush.msra.mxu1 %v1823_v62 }
 0xb6d   : > { %v1815_v0 = vpop.f32.mrf.mxu0 }
 0xb6e   : > { %v1816_v1 = vadd.f32 %v2467_v63, %v1815_v0 }
 0xb70   : > { %v1821_v2 = vmax.f32 %v1816_v1, 0.0 }
 0xb72   : > { %1859 = vmatmul.f32.vlgmr.msra.gmra.mxu1 %v1821_v2 }
 0xb73   : > { %v1818_v3 = vpop.f32.mrf.mxu2 }
 0xb74   : > { %v1819_v4 = vadd.f32 %v2467_v63, %v1818_v3 }
 0xb76   : > { %v1822_v5 = vmax.f32 %v1819_v4, 0.0 }
 0xb78   : > { %1862 = vmatmul.f32.vlgmr.msra.gmra.mxu3 %v1822_v5 }
 0xbef   : > { %v1860_v7 = vpop.f32.mrf.mxu1 }
 0xbf0   : > { %v1861_v8 = vadd.f32 %v2468_v6, %v1860_v7 }
 0xbf2   : > { %1866 = vst [vmem:[#allocation16] sm:$0xff] %v1861_v8 }
 0xbfb   : > { %v1863_v9 = vpop.f32.mrf.mxu3 }
 0xbfc   : > { %v1864_v20 = vadd.f32 %v2468_v6, %v1863_v9 }
 0xbfe   : > { %1867 = vst [vmem:[#allocation16 + $0x8] sm:$0xff] %v1864_v20 }
 0xbff PF: > { %p2355_p0 = scmp.eq.s32.totalorder %s2901_s5, 3  ;;  %s3367_s12 = sld [smem:[#allocation44_spill]] }
 0xc00   : > { %s2744_s0 = smov [#allocation16]   ;;  %s2745_s24 = smov 128  }
 0xc01   : > { %s1873_s27 = sshll.u32 %s2744_s0, 4  ;;  %s2746_s22 = smov 8   ;;  %s1874_s27 = int_to_ptr.vmem [resolvable:$true] %s1873_s27 }
 0xc05   : > { %s1875_s20 = sshll.u32 %s3367_s12, 4  ;;  %s1876_s20 = int_to_ptr.hbm [resolvable:$true] %s1875_s20 }
 0xc06   : > { %2326 = dma.vmem_to_hbm [thread:$0]  (%p2355_p0), %s1874_s27, 256, %s1876_s20, [#allocation9], %s2745_s24, %s2745_s24, %s2746_s22  }
 0xc07   : > { %2700 = dma.done.wait (%p2355_p0), [#allocation9], 256  }
 0xc08   : > { %2702 = vsyncadd (%p2355_p0), [#allocation9], 4294967040 }
 0xc09 PF: > { %s3368_s15 = sld [smem:[#allocation24_spill]]  ;;  %s3372_s3 = smov %s2709_s28 }
 0xc0a   : > { %s3369_s30 = sld [smem:[#allocation23_spill]]  ;;  %s3373_s28 = smov %s2713_s29 }
 0xc0b   : > { %s3370_s0 = sld [smem:[#allocation25_spill]]  ;;  %s3374_s29 = smov %s2978_s18 }
 0xc0c   : > { %s3371_s5 = sld [smem:[#allocation26_spill]]  ;;  %s3375_s4 = smov %s2729_s23 }
 0xc0f   : > { %s36_s1 = sadd.s32 1, %s3368_s15  }
 0xc10   : > { %p33_p2 = scmp.ge.s32.totalorder %s36_s1, 6  }
 0xc12   : > { %s3376_s23 = smov %s3371_s5  ;;  %35 = sbr.rel (!%p33_p2) target bundleno = 26 (0x1a), region = 207 }
 0xc17   :  { %1892 = vsyncpa [#allocation8], 1 }
 0xc18   :  { %1894 = vsyncpa [#allocation8 + $0x1], 1 }
 0xc19   :  { %1895 = vsyncpa [#allocation11], 1 }
 0xc1a   :  { %1896 = vsyncpa [#allocation15], 1 }
 0xc1b   :  { %1897 = vsyncpa [#allocation9], 1 }
 0xc1c   :  { %1899 = vsyncpa [#allocation9 + $0x1], 1 }

</bundles_post_ra>
